<compile_context>
chip_gen: v7x
topology: tpu7x:2x2x1
jax: 0.10.0
libtpu: 0.0.40
codegen_flags: <defaults>
</compile_context>

<pallas_src>
import math

import jax
import jax.numpy as jnp
from jax import lax
from jax.experimental import pallas as pl
from jax.experimental.pallas import tpu as pltpu


def _time_mask(rows, cols):
    return lax.broadcasted_iota(jnp.int32, (rows, cols), 1) == 0


def _lorentz_linear(xin_bf16, wT_bf16, b_f32, escale, is_time):
    """LorentzLinear forward (eval mode). bf16 matmul operands, f32 elementwise math."""
    # nn.Linear: y = x @ W^T + b   (bf16 operands on the MXU, f32 accumulation)
    y = jnp.dot(xin_bf16, wT_bf16, preferred_element_type=jnp.float32) + b_f32
    time = jax.nn.sigmoid(y[:, 0:1]) * escale + 1.1                       # (rows, 1)
    spatial = jnp.where(is_time, 0.0, y)
    ss = jnp.sum(spatial * spatial, axis=-1, keepdims=True)
    # sqrt((time^2 - 1)/clamp_min(ss,1e-8)) == sqrt(time^2-1) * rsqrt(clamp(ss))  (EUP-friendly)
    sp_scale = jnp.sqrt(time * time - 1.0) * lax.rsqrt(jnp.maximum(ss, 1e-8))
    return jnp.where(is_time, time, y * sp_scale)


def key_proj_kernel(sc_ref, x_ref, wkT_ref, bk_ref, out_ref):
    """K = LorentzLinear_key(x) for one row tile; sc_ref = [exp(k_scale)]."""
    rows, Dp = out_ref.shape
    is_time = _time_mask(rows, Dp)
    out_ref[...] = _lorentz_linear(x_ref[...], wkT_ref[...], bk_ref[...],
                                   sc_ref[0], is_time).astype(out_ref.dtype)


def lorentz_agg_kernel(sc_ref,                              # SMEM prefetch: [exp(q_scale), 2/att_scale, 2/att_scale + att_bias]
                       xq_ref, xk_ref, kproj_ref, adj_ref,  # VMEM input tiles (bf16 / bf16 / bf16 / int8)
                       wqT_ref, bq_ref,                     # VMEM weights (bf16 / f32, index-constant)
                       out_ref,                             # VMEM output tile (tq, Dp) f32
                       q_scr, acc_scr):                     # VMEM scratch: folded query (bf16), support acc (f32)
    k = pl.program_id(1)
    tq, Dp = acc_scr.shape

    # --- init (first key tile): project query tile, fold Minkowski signature + attention affine ---
    @pl.when(k == 0)
    def _():
        is_time = _time_mask(tq, Dp)
        q = _lorentz_linear(xq_ref[...], wqT_ref[...], bq_ref[...], sc_ref[0], is_time)
        #   att = sigmoid((2 + 2*cinner)/scale + bias) = sigmoid(<q_fold, key> + const)
        #   with q_fold = sign ⊙ q * (2/scale),  const = 2/scale + bias
        q_scr[...] = (jnp.where(is_time, -q, q) * sc_ref[1]).astype(q_scr.dtype)
        acc_scr[...] = jnp.zeros_like(acc_scr)

    # --- steady state: folded cross inner product -> sigmoid -> adjacency mask -> aggregate ---
    logits = lax.dot_general(q_scr[...], kproj_ref[...],
                             (((1,), (1,)), ((), ())),
                             preferred_element_type=jnp.float32)           # (tq, tk)
    att = jax.nn.sigmoid(logits + sc_ref[2])
    att = jnp.where(adj_ref[...] != 0, att, 0.0)                           # binary adjacency mask
    acc_scr[...] += jnp.dot(att.astype(jnp.bfloat16), xk_ref[...],
                            preferred_element_type=jnp.float32)

    # --- finalize (last key tile): Lorentz renormalization ---
    @pl.when(k == pl.num_programs(1) - 1)
    def _():
        is_time = _time_mask(tq, Dp)
        s = acc_scr[...]
        inner = jnp.sum(jnp.where(is_time, -s, s) * s, axis=-1, keepdims=True)   # <s, s>_L
        out_ref[...] = (s * lax.rsqrt(jnp.maximum(jnp.abs(inner), 1e-8))).astype(out_ref.dtype)


def _ceil_to(a, m):
    return ((a + m - 1) // m) * m


def _pad_to(a, shape):
    pads = [(0, t - s) for s, t in zip(a.shape, shape)]
    return jnp.pad(a, pads)


def lorentz_agg(x, adj, wq, bq, wk, bk, scalars, *, tq=1024, tk=512):
    """Fused LorentzAgg forward (use_att=True path). scalars = [exp(q_scale), exp(k_scale), bias, scale]."""
    N, D = x.shape
    Dp = _ceil_to(max(D, 128), 128)            # D=16 -> 128; do not pad beyond 128

    # Tile sizing: clamp to the padded problem so small N stays tight; keep tq a multiple of tk
    # so a single padded extent Np serves both grid axes.
    tk = min(tk, _ceil_to(N, 128))
    tq = min(tq, _ceil_to(N, tk))
    tq = max(tk, (tq // tk) * tk)
    Np = _ceil_to(N, tq)
    # Keep >= 2 query row tiles when possible so v7x's two TensorCores both get work.
    if Np // tq < 2 and tq // 2 >= tk and tq % (2 * tk) == 0:
        tq //= 2

    # HBM-side dtypes: x/weights bf16 (matmuls run bf16 anyway), adjacency int8 (binary), biases f32.
    xp = _pad_to(x.astype(jnp.float32), (Np, Dp)).astype(jnp.bfloat16)
    adjp = (_pad_to(adj, (Np, Np)) != 0).astype(jnp.int8)                 # padded rows/cols = 0
    wqT = _pad_to(wq.T.astype(jnp.float32), (Dp, Dp)).astype(jnp.bfloat16)   # pre-transposed (in, out)
    wkT = _pad_to(wk.T.astype(jnp.float32), (Dp, Dp)).astype(jnp.bfloat16)
    bqp = _pad_to(bq.astype(jnp.float32), (Dp,)).reshape(1, Dp)
    bkp = _pad_to(bk.astype(jnp.float32), (Dp,)).reshape(1, Dp)

    q_escale = scalars[0].astype(jnp.float32)
    k_escale = scalars[1].astype(jnp.float32)
    att_bias = scalars[2].astype(jnp.float32)
    att_scale = scalars[3].astype(jnp.float32)
    two_over = 2.0 / att_scale
    main_sc = jnp.stack([q_escale, two_over, two_over + att_bias])
    key_sc = jnp.reshape(k_escale, (1,))

    # --- pass 1: key projection, computed once over all nodes ---
    kproj = pl.pallas_call(
        key_proj_kernel,
        out_shape=jax.ShapeDtypeStruct((Np, Dp), jnp.bfloat16),
        grid_spec=pltpu.PrefetchScalarGridSpec(
            num_scalar_prefetch=1,
            grid=(Np // tk,),
            in_specs=[
                pl.BlockSpec((tk, Dp), lambda i, sc: (i, 0)),   # x row tile
                pl.BlockSpec((Dp, Dp), lambda i, sc: (0, 0)),   # Wk^T
                pl.BlockSpec((1, Dp), lambda i, sc: (0, 0)),    # bk
            ],
            out_specs=pl.BlockSpec((tk, Dp), lambda i, sc: (i, 0)),
        ),
        compiler_params=pltpu.CompilerParams(
            dimension_semantics=("parallel",),
            vmem_limit_bytes=32 * 1024 * 1024),
    )(key_sc, xp, wkT, bkp)

    # --- pass 2: fused attention + aggregation + Lorentz renorm ---
    grid = (Np // tq, Np // tk)
    out = pl.pallas_call(
        lorentz_agg_kernel,
        out_shape=jax.ShapeDtypeStruct((Np, Dp), jnp.float32),
        grid_spec=pltpu.PrefetchScalarGridSpec(
            num_scalar_prefetch=1,
            grid=grid,
            in_specs=[
                pl.BlockSpec((tq, Dp), lambda i, k, sc: (i, 0)),    # x (query rows)
                pl.BlockSpec((tk, Dp), lambda i, k, sc: (k, 0)),    # x (key rows / aggregation values)
                pl.BlockSpec((tk, Dp), lambda i, k, sc: (k, 0)),    # precomputed key projection
                pl.BlockSpec((tq, tk), lambda i, k, sc: (i, k)),    # adjacency tile (int8)
                pl.BlockSpec((Dp, Dp), lambda i, k, sc: (0, 0)),    # Wq^T
                pl.BlockSpec((1, Dp), lambda i, k, sc: (0, 0)),     # bq
            ],
            out_specs=pl.BlockSpec((tq, Dp), lambda i, k, sc: (i, 0)),
            scratch_shapes=[pltpu.VMEM((tq, Dp), jnp.bfloat16),     # folded query tile
                            pltpu.VMEM((tq, Dp), jnp.float32)],     # support accumulator
        ),
        compiler_params=pltpu.CompilerParams(
            dimension_semantics=("parallel", "arbitrary"),
            vmem_limit_bytes=32 * 1024 * 1024),
    )(main_sc, xp, xp, kproj, adjp, wqT, bqp)
    return out[:N, :D]


def init_lorentz_linear_params(key, in_features, out_features):
    """Deterministic replica of LorentzLinear.reset_parameters()."""
    stdv = 1.0 / math.sqrt(out_features)
    w = jax.random.uniform(key, (out_features, in_features),
                           minval=-stdv, maxval=stdv, dtype=jnp.float32)
    w = w.at[:, 0].set(0.0)                  # zero the time-coordinate input column
    b = jnp.zeros((out_features,), jnp.float32)
    return w, b, math.exp(math.log(10.0))    # self.scale = log(10), kernel uses exp(scale)


def lorentz_agg_ref(x, adj, wq, bq, wk, bk, scalars):
    """Pure-JAX f32 reference of the PyTorch forward (eval mode)."""
    def lin(xv, w, b, escale):
        y = xv @ w.T + b
        time = jax.nn.sigmoid(y[:, :1]) * escale + 1.1
        sp = y[:, 1:]
        ss = jnp.maximum(jnp.sum(sp * sp, -1, keepdims=True), 1e-8)
        return jnp.concatenate([time, sp * jnp.sqrt((time * time - 1.0) / ss)], axis=-1)
    q = lin(x, wq, bq, scalars[0])
    k = lin(x, wk, bk, scalars[1])
    sign = jnp.concatenate([-jnp.ones((1,)), jnp.ones((x.shape[1] - 1,))])
    cinner = (q * sign) @ k.T
    att = jax.nn.sigmoid((2.0 + 2.0 * cinner) / scalars[3] + scalars[2]) * adj
    s = att @ x
    inner = jnp.sum((s * sign) * s, -1, keepdims=True)
    return s / jnp.sqrt(jnp.maximum(jnp.abs(inner), 1e-8))


if __name__ == "__main__":
    N, D = 200, 16                              # nodes, Lorentz feature dim
    root = jax.random.PRNGKey(0)
    kx, ka, kq, kk = jax.random.split(root, 4)

    # Node features on the Lorentz hyperboloid (time = sqrt(1 + |spatial|^2)).
    spatial = 0.5 * jax.random.normal(kx, (N, D - 1), dtype=jnp.float32)
    time = jnp.sqrt(1.0 + jnp.sum(spatial * spatial, axis=-1, keepdims=True))
    x = jnp.concatenate([time, spatial], axis=-1)

    adj = (jax.random.uniform(ka, (N, N)) < 0.05).astype(jnp.float32)
    adj = jnp.maximum(adj, jnp.eye(N, dtype=jnp.float32))   # add self-loops

    wq, bq, q_escale = init_lorentz_linear_params(kq, D, D)
    wk, bk, k_escale = init_lorentz_linear_params(kk, D, D)
    att_bias = 20.0                              # nn.Parameter(zeros(()) + 20)
    att_scale = math.sqrt(D)                     # nn.Parameter(zeros(()) + sqrt(in_features))
    scalars = jnp.array([q_escale, k_escale, att_bias, att_scale], dtype=jnp.float32)

    out = lorentz_agg(x, adj, wq, bq, wk, bk, scalars)
    jax.block_until_ready(out)

    ref = lorentz_agg_ref(x, adj, wq, bq, wk, bk, scalars)
    assert out.shape == (N, D) and out.dtype == jnp.float32
    assert bool(jnp.all(jnp.isfinite(out)))
    assert bool(jnp.allclose(out, ref, rtol=5e-2, atol=2e-2)), \
        float(jnp.max(jnp.abs(out - ref)))
    print("KERNEL_OK")
</pallas_src>

<mosaic_0001>
module attributes {stable_mosaic.version = 11 : i64} {
  func.func @key_proj_kernel(%arg0: i32, %arg1: memref<1xf32, #tpu.memory_space<smem>>, %arg2: memref<256x128xbf16, #tpu.memory_space<vmem>>, %arg3: memref<128x128xbf16, #tpu.memory_space<vmem>>, %arg4: memref<1x128xf32, #tpu.memory_space<vmem>>, %arg5: memref<256x128xbf16, #tpu.memory_space<vmem>>) attributes {dimension_semantics = [#tpu.dimension_semantics<parallel>], iteration_bounds = array<i64: 1>, scalar_prefetch = 1 : i64, scratch_operands = 0 : i64, tpu.core_type = #tpu.core_type<tc>, window_params = [{transform_indices = @transform_0, window_bounds = array<i64: 256, 128>}, {pipeline_mode = #tpu.pipeline_mode<synchronous>, transform_indices = @transform_1, window_bounds = array<i64: 128, 128>}, {pipeline_mode = #tpu.pipeline_mode<synchronous>, transform_indices = @transform_2, window_bounds = array<i64: 1, 128>}, {transform_indices = @transform_3, window_bounds = array<i64: 256, 128>}]} {
    %0 = tpu.iota {dimensions = array<i32: 1>} : vector<256x128xi32>
    %c0_i32 = arith.constant 0 : i32
    %1 = vector.broadcast %c0_i32 : i32 to vector<256x128xi32>
    %2 = arith.cmpi eq, %0, %1 : vector<256x128xi32>
    %c0 = arith.constant 0 : index
    %c0_0 = arith.constant 0 : index
    %3 = vector.load %arg2[%c0, %c0_0] : memref<256x128xbf16, #tpu.memory_space<vmem>>, vector<256x128xbf16>
    %c0_1 = arith.constant 0 : index
    %c0_2 = arith.constant 0 : index
    %4 = vector.load %arg3[%c0_1, %c0_2] : memref<128x128xbf16, #tpu.memory_space<vmem>>, vector<128x128xbf16>
    %c0_3 = arith.constant 0 : index
    %c0_4 = arith.constant 0 : index
    %5 = vector.load %arg4[%c0_3, %c0_4] : memref<1x128xf32, #tpu.memory_space<vmem>>, vector<1x128xf32>
    %c0_5 = arith.constant 0 : index
    %6 = memref.load %arg1[%c0_5] : memref<1xf32, #tpu.memory_space<smem>>
    %cst = arith.constant dense<0.000000e+00> : vector<256x128xf32>
    %7 = tpu.matmul %3, %4, %cst {dimension_numbers = #tpu.dot_dimension_numbers<[1], [0], [0], [1], [0, 0, 1, 1], [], []>} : vector<256x128xbf16>, vector<128x128xbf16>, vector<256x128xf32> -> vector<256x128xf32>
    %8 = vector.broadcast %5 : vector<1x128xf32> to vector<256x128xf32>
    %9 = arith.addf %7, %8 : vector<256x128xf32>
    %10 = vector.extract_strided_slice %9 {offsets = [0, 0], sizes = [256, 1], strides = [1, 1]} : vector<256x128xf32> to vector<256x1xf32>
    %11 = arith.negf %10 : vector<256x1xf32>
    %12 = math.exp %11 : vector<256x1xf32>
    %cst_6 = arith.constant 1.000000e+00 : f32
    %13 = vector.broadcast %cst_6 : f32 to vector<256x1xf32>
    %14 = arith.addf %13, %12 : vector<256x1xf32>
    %15 = arith.divf %13, %14 : vector<256x1xf32>
    %16 = vector.broadcast %6 : f32 to vector<256x1xf32>
    %17 = arith.mulf %15, %16 : vector<256x1xf32>
    %cst_7 = arith.constant 1.100000e+00 : f32
    %18 = vector.broadcast %cst_7 : f32 to vector<256x1xf32>
    %19 = arith.addf %17, %18 : vector<256x1xf32>
    %cst_8 = arith.constant 0.000000e+00 : f32
    %20 = vector.broadcast %cst_8 : f32 to vector<256x128xf32>
    %21 = arith.select %2, %20, %9 : vector<256x128xi1>, vector<256x128xf32>
    %22 = arith.mulf %21, %21 : vector<256x128xf32>
    %cst_9 = arith.constant dense<0.000000e+00> : vector<256xf32>
    %23 = vector.multi_reduction <add>, %22, %cst_9 [1] : vector<256x128xf32> to vector<256xf32>
    %24 = vector.shape_cast %23 : vector<256xf32> to vector<256x1xf32>
    %25 = arith.mulf %19, %19 : vector<256x1xf32>
    %cst_10 = arith.constant 1.000000e+00 : f32
    %26 = vector.broadcast %cst_10 : f32 to vector<256x1xf32>
    %27 = arith.subf %25, %26 : vector<256x1xf32>
    %28 = math.sqrt %27 : vector<256x1xf32>
    %cst_11 = arith.constant 9.99999993E-9 : f32
    %29 = vector.broadcast %cst_11 : f32 to vector<256x1xf32>
    %30 = arith.maximumf %24, %29 : vector<256x1xf32>
    %31 = math.rsqrt %30 : vector<256x1xf32>
    %32 = arith.mulf %28, %31 : vector<256x1xf32>
    %33 = vector.broadcast %32 : vector<256x1xf32> to vector<256x128xf32>
    %34 = arith.mulf %9, %33 : vector<256x128xf32>
    %35 = vector.shape_cast %19 : vector<256x1xf32> to vector<256x1xf32>
    %36 = vector.broadcast %35 : vector<256x1xf32> to vector<256x128xf32>
    %37 = arith.select %2, %36, %34 : vector<256x128xi1>, vector<256x128xf32>
    %38 = arith.truncf %37 : vector<256x128xf32> to vector<256x128xbf16>
    %c0_12 = arith.constant 0 : index
    %c0_13 = arith.constant 0 : index
    %39 = vector.load %arg5[%c0_12, %c0_13] : memref<256x128xbf16, #tpu.memory_space<vmem>>, vector<256x128xbf16>
    tpu.vector_store %arg5[%c0_12, %c0_13], %38 {strides = array<i32>} : memref<256x128xbf16, #tpu.memory_space<vmem>>, vector<256x128xbf16>,
    return
  }
  func.func @transform_0(%arg0: i32, %arg1: memref<1xf32, #tpu.memory_space<smem>>) -> (i32, i32) {
    %c0_i32 = arith.constant 0 : i32
    %c0_i32_0 = arith.constant 0 : i32
    return %arg0, %c0_i32 : i32, i32
  }
  func.func @transform_1(%arg0: i32, %arg1: memref<1xf32, #tpu.memory_space<smem>>) -> (i32, i32) {
    %c0_i32 = arith.constant 0 : i32
    %c0_i32_0 = arith.constant 0 : i32
    %c0_i32_1 = arith.constant 0 : i32
    return %c0_i32, %c0_i32_0 : i32, i32
  }
  func.func @transform_2(%arg0: i32, %arg1: memref<1xf32, #tpu.memory_space<smem>>) -> (i32, i32) {
    %c0_i32 = arith.constant 0 : i32
    %c0_i32_0 = arith.constant 0 : i32
    %c0_i32_1 = arith.constant 0 : i32
    return %c0_i32, %c0_i32_0 : i32, i32
  }
  func.func @transform_3(%arg0: i32, %arg1: memref<1xf32, #tpu.memory_space<smem>>) -> (i32, i32) {
    %c0_i32 = arith.constant 0 : i32
    %c0_i32_0 = arith.constant 0 : i32
    return %arg0, %c0_i32 : i32, i32
  }
}

</mosaic_0001>

<bundles_post_ra>
// kernel: tpu_custom_call.1
= control target key start
LH: loop header
LB: loop body
LE: loop exit
PB: predicated region body
PF: predicated region fallthrough
CT: control target
= control target key end

     0   :  { %10 = vsyncpa [#allocation5], 0  ;;  %s3647_s0 = inlined_call_operand.<no memory space> [shape: f32[1], index: 0, kind: input, shape index: {}]   ;;  %s3648_s1 = inlined_call_operand.hbm [shape: bf16[256,128], index: 1, kind: input, shape index: {}]   ;;  %s3649_s2 = inlined_call_operand.hbm [shape: bf16[128,128], index: 2, kind: input, shape index: {}]   ;;  %s3650_s3 = inlined_call_operand.vmem [shape: f32[1,128], index: 3, kind: input, shape index: {}]   ;;  %s3651_s4 = inlined_call_operand.hbm [shape: bf16[256,128], index: 4, kind: output, shape index: {}]  }
   0x1   :  { %11 = vsyncpa [#allocation8], 0 }
   0x2   :  { %12 = vsyncpa [#allocation6], 0  ;;  %s2517_s15 = smov [#allocation4]   ;;  %s2445_s19 = scalar_lea.hbm %s3648_s1, 2048 }
   0x3   :  { %s18_s16 = sshll.u32 %s2517_s15, 4  ;;  %p2446_p0 = scmp.ne.s32.totalorder %s3648_s1, %s2445_s19  ;;  %s19_s16 = int_to_ptr.vmem [resolvable:$true] %s18_s16 }
   0x4   :  { %p2449_p1 = scmp.lt.u32.totalorder %s2445_s19, %s3648_s1 }
   0x6   :  { %p2451_p2 = pnand %p2449_p1, %p2446_p0 }
   0x8   :  { %2454 = shalt.err (!%p2451_p2)
}
   0x9   :  { %s2455_s24 = scalar_lea.vmem %s19_s16, 2048  ;;  %p2460_p4 = scmp.lt.s32.totalorder %s19_s16, %s19_s16 }
   0xa   :  { %p2456_p3 = scmp.ne.s32.totalorder %s19_s16, %s2455_s24  ;;  %p2461_p5 = scmp.lt.s32.totalorder %s2455_s24, %s2455_s24 }
   0xc   :  { %p2462_p6 = por %p2461_p5, %p2460_p4 }
   0xe   :  { %p2463_p7 = pnand %p2462_p6, %p2456_p3 }
  0x10   :  { %2466 = shalt.err (!%p2463_p7)
}
  0x11   :  { %s2518_s25 = smov 64   ;;  %s2519_s26 = smov 4  }
  0x12   :  { %24 = dma.hbm_to_vmem [thread:$0]  %s3648_s1, 2048, %s19_s16, [#allocation5], %s2518_s25, %s2518_s25, %s2519_s26  }
  0x13   :  { %s2520_s29 = smov [#allocation7]   ;;  %s2467_s7 = scalar_lea.hbm %s3649_s2, 1024 }
  0x14   :  { %s30_s30 = sshll.u32 %s2520_s29, 4  ;;  %p2468_p8 = scmp.ne.s32.totalorder %s3649_s2, %s2467_s7  ;;  %s31_s30 = int_to_ptr.vmem [resolvable:$true] %s30_s30 }
  0x15   :  { %p2471_p9 = scmp.lt.u32.totalorder %s2467_s7, %s3649_s2 }
  0x17   :  { %p2473_p10 = pnand %p2471_p9, %p2468_p8 }
  0x19   :  { %2476 = shalt.err (!%p2473_p10)
}
  0x1a   :  { %s2477_s12 = scalar_lea.vmem %s31_s30, 1024  ;;  %p2482_p12 = scmp.lt.s32.totalorder %s31_s30, %s31_s30 }
  0x1b   :  { %p2478_p11 = scmp.ne.s32.totalorder %s31_s30, %s2477_s12  ;;  %p2483_p13 = scmp.lt.s32.totalorder %s2477_s12, %s2477_s12 }
  0x1d   :  { %p2484_p0 = por %p2483_p13, %p2482_p12 }
  0x1f   :  { %p2485_p1 = pnand %p2484_p0, %p2478_p11 }
  0x21   :  { %2488 = shalt.err (!%p2485_p1)
}
  0x22   :  { %36 = dma.hbm_to_vmem [thread:$0]  %s3649_s2, 1024, %s31_s30, [#allocation8], %s2518_s25, %s2518_s25, %s2519_s26  }
  0x23   :  { %2511 = dma.done.wait [#allocation5], 2048  }
  0x24   :  { %2512 = vsyncadd [#allocation5], 4294965248 }
  0x25   :  { %2513 = dma.done.wait [#allocation8], 1024  }
  0x26   :  { %2514 = vsyncadd [#allocation8], 4294966272  ;;  %v2165_v0 = vld [vmem:[#allocation7] sm:$0xff]   ;;  %v2166_v1 = vld [vmem:[#allocation7 + $0x8] sm:$0xff]   ;;  %v2521_v24 = vmov 0   ;;  %v46_v25 = vlaneseq }
  0x27   :  { %2013 = vmatprep.subr.bf16.mxu0 %v2165_v0  ;;  %2061 = vmatprep.subr.bf16.mxu1 %v2165_v0  ;;  %v2167_v2 = vld [vmem:[#allocation7 + $0x10] sm:$0xff]   ;;  %v2168_v3 = vld [vmem:[#allocation7 + $0x18] sm:$0xff]   ;;  %v2173_v4 = vld [vmem:[#allocation4] sm:$0xff]  }
  0x28   :  { %2014 = vmatpush3.bf16.msra.mxu0 %v2165_v0  ;;  %2069 = vmatpush3.bf16.msra.mxu1 %v2165_v0  ;;  %v2174_v5 = vld [vmem:[#allocation4 + $0x40] sm:$0xff]   ;;  %v2170_v7 = vld [vmem:[#allocation7 + $0x28] sm:$0xff]   ;;  %v2171_v8 = vld [vmem:[#allocation7 + $0x30] sm:$0xff]   ;;  %v2583_v27 = vand.u32 127, %v46_v25 }
  0x29   :  { %2015 = vmatprep.subr.bf16.mxu0 %v2166_v1  ;;  %2062 = vmatprep.subr.bf16.mxu1 %v2166_v1  ;;  %v2169_v6 = vld [vmem:[#allocation7 + $0x20] sm:$0xff]   ;;  %v2172_v9 = vld [vmem:[#allocation7 + $0x38] sm:$0xff]   ;;  %v2175_v10 = vld [vmem:[#allocation4 + $0x8] sm:$0xff]  }
  0x2a   :  { %2029 = vmatprep.mubr.bf16.mxu0 %v2173_v4  ;;  %2045 = vmatprep.mubr.bf16.mxu1 %v2174_v5  ;;  %v2176_v11 = vld [vmem:[#allocation4 + $0x48] sm:$0xff]   ;;  %v2177_v12 = vld [vmem:[#allocation4 + $0x10] sm:$0xff]   ;;  %v2179_v14 = vld [vmem:[#allocation4 + $0x18] sm:$0xff]   ;;  %3683 = vst [vmem:[#allocation13_spill] sm:$0xff] %v2583_v27  ;;  %vm48_vm0 = vcmp.eq.s32.totalorder %v2583_v27, 0 }
  0x2b   :  { %v2178_v13 = vld [vmem:[#allocation4 + $0x50] sm:$0xff]   ;;  %v2180_v15 = vld [vmem:[#allocation4 + $0x58] sm:$0xff]   ;;  %v2181_v16 = vld [vmem:[#allocation4 + $0x20] sm:$0xff]   ;;  %2094 = vset.pattern.permute.xlu1 %v2521_v24  ;;  %2083 = vset.pattern.permute.xlu0 %v2521_v24 }
  0x2c   :  { %2016 = vmatpush3.bf16.msra.mxu0 %v2166_v1  ;;  %2070 = vmatpush3.bf16.msra.mxu1 %v2166_v1  ;;  %v2183_v17 = vld [vmem:[#allocation4 + $0x60] sm:$0xff]   ;;  %v2182_v18 = vld [vmem:[#allocation4 + $0x28] sm:$0xff]   ;;  %v2185_v20 = vld [vmem:[#allocation4 + $0x30] sm:$0xff]  }
  0x2d   :  { %2017 = vmatprep.subr.bf16.mxu0 %v2167_v2  ;;  %2063 = vmatprep.subr.bf16.mxu1 %v2167_v2  ;;  %v2184_v19 = vld [vmem:[#allocation4 + $0x68] sm:$0xff]   ;;  %v2187_v21 = vld [vmem:[#allocation4 + $0x70] sm:$0xff]   ;;  %v2186_v22 = vld [vmem:[#allocation4 + $0x38] sm:$0xff]  }
  0x2e   :  { %v2188_v23 = vld [vmem:[#allocation4 + $0x78] sm:$0xff]   ;;  %v2581_v26 = vld [vmem:[%s3650_s3] ss:$0 sm:$0xff] }
  0x30   :  { %2018 = vmatpush3.bf16.msra.mxu0 %v2167_v2  ;;  %2071 = vmatpush3.bf16.msra.mxu1 %v2167_v2 }
  0x31   :  { %2019 = vmatprep.subr.bf16.mxu0 %v2168_v3  ;;  %2064 = vmatprep.subr.bf16.mxu1 %v2168_v3 }
  0x34   :  { %2020 = vmatpush3.bf16.msra.mxu0 %v2168_v3  ;;  %2072 = vmatpush3.bf16.msra.mxu1 %v2168_v3 }
  0x35   :  { %2021 = vmatprep.subr.bf16.mxu0 %v2169_v6  ;;  %2065 = vmatprep.subr.bf16.mxu1 %v2169_v6 }
  0x38   :  { %2022 = vmatpush3.bf16.msra.mxu0 %v2169_v6  ;;  %2073 = vmatpush3.bf16.msra.mxu1 %v2169_v6 }
  0x39   :  { %2023 = vmatprep.subr.bf16.mxu0 %v2170_v7  ;;  %2066 = vmatprep.subr.bf16.mxu1 %v2170_v7 }
  0x3c   :  { %2024 = vmatpush3.bf16.msra.mxu0 %v2170_v7  ;;  %2074 = vmatpush3.bf16.msra.mxu1 %v2170_v7 }
  0x3d   :  { %2025 = vmatprep.subr.bf16.mxu0 %v2171_v8  ;;  %2067 = vmatprep.subr.bf16.mxu1 %v2171_v8 }
  0x40   :  { %2026 = vmatpush3.bf16.msra.mxu0 %v2171_v8  ;;  %2075 = vmatpush3.bf16.msra.mxu1 %v2171_v8 }
  0x41   :  { %2027 = vmatprep.subr.bf16.mxu0 %v2172_v9  ;;  %2068 = vmatprep.subr.bf16.mxu1 %v2172_v9 }
  0x44   :  { %2028 = vmatpush3.bf16.msra.mxu0 %v2172_v9  ;;  %2076 = vmatpush3.bf16.msra.mxu1 %v2172_v9 }
  0x47   :  { %2030 = vmatmul.mubr.bf16.vlgmr.msra.gmra.mrb[0].mxu0 %v2175_v10  ;;  %2046 = vmatmul.mubr.bf16.vlgmr.msra.gmra.mrb[0].mxu1 %v2176_v11 }
  0x48   :  { %2033 = vmatprep.mubr.bf16.mxu0 %v2177_v12  ;;  %2049 = vmatprep.mubr.bf16.mxu1 %v2178_v13 }
  0x4f   :  { %2034 = vmatmul.mubr.bf16.gmra.mrb[4].mxu0 %v2179_v14  ;;  %2050 = vmatmul.mubr.bf16.gmra.mrb[4].mxu1 %v2180_v15 }
  0x50   :  { %2037 = vmatprep.mubr.bf16.mxu0 %v2181_v16  ;;  %2053 = vmatprep.mubr.bf16.mxu1 %v2183_v17 }
  0x57   :  { %2038 = vmatmul.mubr.bf16.gmra.mrb[8].mxu0 %v2182_v18  ;;  %2054 = vmatmul.mubr.bf16.gmra.mrb[8].mxu1 %v2184_v19 }
  0x58   :  { %2041 = vmatprep.mubr.bf16.mxu0 %v2185_v20  ;;  %2057 = vmatprep.mubr.bf16.mxu1 %v2187_v21 }
  0x5f   :  { %2042 = vmatmul.mubr.bf16.gmra.mrb[12].mxu0 %v2186_v22  ;;  %2058 = vmatmul.mubr.bf16.gmra.mrb[12].mxu1 %v2188_v23 }
 0x11a   :  { %v2031_v28 = vpop.f32.mrb[0].mxu0  ;;  %v2047_v29 = vpop.f32.mrb[0].mxu1 }
 0x11b   :  { %v2586_v30 = vadd.f32 %v2047_v29, %v2581_v26  ;;  %v283_v31 = vpop.f32.mrb[1].mxu0  ;;  %v347_v32 = vpop.f32.mrb[1].mxu1  ;;  %v2590_v35 = vadd.f32 %v2031_v28, %v2581_v26 }
 0x11c   :  { %v2032_v33 = vpop.f32.mrb[2].mxu0  ;;  %v2048_v34 = vpop.f32.mrb[2].mxu1  ;;  %v2593_v36 = vadd.f32 %v2581_v26, %v283_v31  ;;  %v2616_v51 = vadd.f32 %v2581_v26, %v347_v32 }
 0x11d   :  { %v286_v37 = vpop.f32.mrb[3].mxu0  ;;  %v350_v38 = vpop.f32.mrb[3].mxu1  ;;  %v2596_v39 = vadd.f32 %v2032_v33, %v2581_v26  ;;  %v685_v40 = vsel %vm48_vm0, 0.0, %v2586_v30  ;;  %v669_v42 = vsel %vm48_vm0, 0.0, %v2590_v35  ;;  %v2608_v47 = vadd.f32 %v2048_v34, %v2581_v26 }
 0x11e   :  { %3684 = vst [vmem:[#allocation14_spill] sm:$0xff] %v2593_v36  ;;  %v717_v41 = vmul.f32 %v685_v40, %v685_v40  ;;  %v667_v43 = vsel %vm48_vm0, 0.0, %v2593_v36  ;;  %v701_v44 = vmul.f32 %v669_v42, %v669_v42  ;;  %3686 = vst [vmem:[#allocation16_spill] sm:$0xff] %v2616_v51  ;;  %v2619_v57 = vadd.f32 %v2581_v26, %v286_v37 }
 0x11f   :  { %3685 = vst [vmem:[#allocation15_spill] sm:$0xff] %v2596_v39  ;;  %v670_v50 = vsel %vm48_vm0, 0.0, %v2596_v39  ;;  %v699_v54 = vmul.f32 %v667_v43, %v667_v43  ;;  %v2622_v59 = vadd.f32 %v2581_v26, %v350_v38  ;;  %v686_v60 = vsel %vm48_vm0, 0.0, %v2608_v47 }
 0x120   :  { %767 = vadd.xlane.f32.xlu0 %v717_v41  ;;  %735 = vadd.xlane.f32.xlu1 %v701_v44  ;;  %3687 = vst [vmem:[#allocation17_spill] sm:$0xff] %v2619_v57  ;;  %v702_v58 = vmul.f32 %v670_v50, %v670_v50  ;;  %v683_v61 = vsel %vm48_vm0, 0.0, %v2616_v51  ;;  %v718_v0 = vmul.f32 %v686_v60, %v686_v60  ;;  %v668_v1 = vsel %vm48_vm0, 0.0, %v2619_v57 }
 0x121   :  { %3688 = vst [vmem:[#allocation18_spill] sm:$0xff] %v2622_v59  ;;  %v715_v62 = vmul.f32 %v683_v61, %v683_v61  ;;  %v684_v5 = vsel %vm48_vm0, 0.0, %v2622_v59  ;;  %v700_v11 = vmul.f32 %v668_v1, %v668_v1  ;;  %v1768_v33 = vmul.f32 -1.442695, %v2590_v35 }
 0x122   :  { %v2035_v45 = vpop.f32.mrb[4].mxu0  ;;  %v2051_v46 = vpop.f32.mrb[4].mxu1  ;;  %v716_v16 = vmul.f32 %v684_v5, %v684_v5  ;;  %v1784_v42 = vmul.f32 -1.442695, %v2586_v30  ;;  %v1766_v44 = vmul.f32 -1.442695, %v2593_v36 }
 0x123   :  { %v299_v48 = vpop.f32.mrb[5].mxu0  ;;  %v2610_v49 = vpop.f32.mrb[5].mxu1  ;;  %v2631_v63 = vadd.f32 %v2035_v45, %v2581_v26  ;;  %v2659_v15 = vadd.f32 %v2051_v46, %v2581_v26  ;;  %2189 = vpow2.f32 %v1768_v33  ;;  %v1782_v46 = vmul.f32 -1.442695, %v2616_v51 }
 0x124   :  { %v2052_v52 = vpop.f32.mrb[6].mxu1  ;;  %v2036_v53 = vpop.f32.mrb[6].mxu0  ;;  %731 = vadd.xlane.f32.xlu0 %v699_v54  ;;  %737 = vadd.xlane.f32.xlu1 %v702_v58  ;;  %v2679_v29 = vadd.f32 %v2581_v26, %v299_v48  ;;  %v2703_v45 = vadd.f32 %v2581_v26, %v2610_v49  ;;  %2191 = vpow2.f32 %v1784_v42  ;;  %v1785_v49 = vmul.f32 -1.442695, %v2608_v47 }
 0x125   :  { %v302_v55 = vpop.f32.mrb[7].mxu0  ;;  %v366_v56 = vpop.f32.mrb[7].mxu1  ;;  %3689 = vst [vmem:[#allocation19_spill] sm:$0xff] %v2631_v63  ;;  %v2639_v4 = vadd.f32 %v2036_v53, %v2581_v26  ;;  %v673_v8 = vsel %vm48_vm0, 0.0, %v2631_v63  ;;  %3691 = vst [vmem:[#allocation21_spill] sm:$0xff] %v2659_v15  ;;  %v2662_v17 = vadd.f32 %v2052_v52, %v2581_v26  ;;  %v689_v20 = vsel %vm48_vm0, 0.0, %v2659_v15 }
 0x126   :  { %v705_v18 = vmul.f32 %v673_v8, %v673_v8  ;;  %v721_v24 = vmul.f32 %v689_v20, %v689_v20  ;;  %3693 = vst [vmem:[#allocation23_spill] sm:$0xff] %v2679_v29  ;;  %v2685_v34 = vadd.f32 %v2581_v26, %v302_v55  ;;  %v671_v40 = vsel %vm48_vm0, 0.0, %v2679_v29  ;;  %3695 = vst [vmem:[#allocation25_spill] sm:$0xff] %v2703_v45 }
 0x127   :  { %3690 = vst [vmem:[#allocation20_spill] sm:$0xff] %v2639_v4  ;;  %v674_v12 = vsel %vm48_vm0, 0.0, %v2639_v4  ;;  %3692 = vst [vmem:[#allocation22_spill] sm:$0xff] %v2662_v17  ;;  %v690_v21 = vsel %vm48_vm0, 0.0, %v2662_v17  ;;  %v2707_v48 = vadd.f32 %v2581_v26, %v366_v56  ;;  %v703_v50 = vmul.f32 %v671_v40, %v671_v40 }
 0x128   :  { %763 = vadd.xlane.f32.xlu0 %v715_v62  ;;  %769 = vadd.xlane.f32.xlu1 %v718_v0  ;;  %v706_v19 = vmul.f32 %v674_v12, %v674_v12  ;;  %v722_v31 = vmul.f32 %v690_v21, %v690_v21  ;;  %3694 = vst [vmem:[#allocation24_spill] sm:$0xff] %v2685_v34  ;;  %v672_v43 = vsel %vm48_vm0, 0.0, %v2685_v34  ;;  %v1769_v52 = vmul.f32 -1.442695, %v2596_v39 }
 0x129   :  { %3696 = vst [vmem:[#allocation26_spill] sm:$0xff] %v2707_v48  ;;  %v704_v54 = vmul.f32 %v672_v43, %v672_v43  ;;  %v687_v55 = vsel %vm48_vm0, 0.0, %v2703_v45  ;;  %v688_v56 = vsel %vm48_vm0, 0.0, %v2707_v48  ;;  %2193 = vpow2.f32 %v1766_v44 }
 0x12a   :  { %v2039_v2 = vpop.f32.mrb[8].mxu0  ;;  %v2636_v3 = vpop.f32.mrb[8].mxu1  ;;  %v1767_v60 = vmul.f32 -1.442695, %v2619_v57  ;;  %2195 = vpow2.f32 %v1782_v46  ;;  %v1783_v62 = vmul.f32 -1.442695, %v2622_v59  ;;  %v719_v0 = vmul.f32 %v687_v55, %v687_v55 }
 0x12b   :  { %v2644_v6 = vpop.f32.mrb[9].mxu0  ;;  %v2646_v7 = vpop.f32.mrb[9].mxu1  ;;  %v2711_v53 = vadd.f32 %v2039_v2, %v2581_v26  ;;  %2197 = vpow2.f32 %v1769_v52  ;;  %v2733_v2 = vadd.f32 %v2636_v3, %v2581_v26  ;;  %v720_v5 = vmul.f32 %v688_v56, %v688_v56 }
 0x12c   :  { %v2040_v9 = vpop.f32.mrb[10].mxu0  ;;  %v2056_v10 = vpop.f32.mrb[10].mxu1  ;;  %733 = vadd.xlane.f32.xlu0 %v700_v11  ;;  %765 = vadd.xlane.f32.xlu1 %v716_v16  ;;  %2199 = vpow2.f32 %v1785_v49  ;;  %v1772_v8 = vmul.f32 -1.442695, %v2631_v63  ;;  %v1788_v3 = vmul.f32 -1.442695, %v2659_v15  ;;  %v2765_v44 = vadd.f32 %v2581_v26, %v2646_v7 }
 0x12d   :  { %v2654_v13 = vpop.f32.mrb[11].mxu0  ;;  %v2656_v14 = vpop.f32.mrb[11].mxu1  ;;  %3697 = vst [vmem:[#allocation27_spill] sm:$0xff] %v2711_v53  ;;  %v2718_v58 = vadd.f32 %v2040_v9, %v2581_v26  ;;  %v677_v61 = vsel %vm48_vm0, 0.0, %v2711_v53  ;;  %3699 = vst [vmem:[#allocation29_spill] sm:$0xff] %v2733_v2  ;;  %v2737_v9 = vadd.f32 %v2056_v10, %v2581_v26  ;;  %2201 = vpow2.f32 %v1767_v60 }
 0x12e   :  { %v709_v11 = vmul.f32 %v677_v61, %v677_v61  ;;  %v693_v16 = vsel %vm48_vm0, 0.0, %v2733_v2  ;;  %2203 = vpow2.f32 %v1783_v62  ;;  %v2748_v10 = vadd.f32 %v2581_v26, %v2644_v6  ;;  %3703 = vst [vmem:[#allocation33_spill] sm:$0xff] %v2765_v44 }
 0x12f   :  { %3698 = vst [vmem:[#allocation28_spill] sm:$0xff] %v2718_v58  ;;  %v678_v1 = vsel %vm48_vm0, 0.0, %v2718_v58  ;;  %3700 = vst [vmem:[#allocation30_spill] sm:$0xff] %v2737_v9  ;;  %2205 = vpow2.f32 %v1772_v8  ;;  %v1770_v20 = vmul.f32 -1.442695, %v2679_v29  ;;  %v2753_v21 = vadd.f32 %v2581_v26, %v2654_v13 }
 0x130   :  { %743 = vadd.xlane.f32.xlu0 %v705_v18  ;;  %745 = vadd.xlane.f32.xlu1 %v706_v19  ;;  %v710_v12 = vmul.f32 %v678_v1, %v678_v1  ;;  %v694_v18 = vsel %vm48_vm0, 0.0, %v2737_v9  ;;  %3701 = vst [vmem:[#allocation31_spill] sm:$0xff] %v2748_v10  ;;  %v2190_v19 = vpop.eup %2189  ;;  %v675_v33 = vsel %vm48_vm0, 0.0, %v2748_v10  ;;  %2207 = vpow2.f32 %v1788_v3 }
 0x131   :  { %3702 = vst [vmem:[#allocation32_spill] sm:$0xff] %v2753_v21  ;;  %v2192_v40 = vpop.eup %2191  ;;  %v1786_v6 = vmul.f32 -1.442695, %v2703_v45  ;;  %v676_v42 = vsel %vm48_vm0, 0.0, %v2753_v21  ;;  %v1789_v13 = vmul.f32 -1.442695, %v2662_v17  ;;  %2209 = vpow2.f32 %v1770_v20 }
 0x132   :  { %v2670_v22 = vpop.f32.mrb[12].mxu0  ;;  %v2672_v23 = vpop.f32.mrb[12].mxu1  ;;  %v2769_v52 = vadd.f32 %v2581_v26, %v2656_v14  ;;  %v524_v49 = vadd.f32 1.0, %v2192_v40  ;;  %v708_v56 = vmul.f32 %v676_v42, %v676_v42  ;;  %v691_v60 = vsel %vm48_vm0, 0.0, %v2765_v44 }
 0x133   :  { %v2674_v25 = vpop.f32.mrb[13].mxu0  ;;  %v2676_v28 = vpop.f32.mrb[13].mxu1  ;;  %2211 = vpow2.f32 %v1786_v6  ;;  %v2779_v1 = vadd.f32 %v2670_v22, %v2581_v26 }
 0x134   :  { %v2681_v32 = vpop.f32.mrb[14].mxu0  ;;  %v2689_v38 = vpop.f32.mrb[14].mxu1  ;;  %775 = vadd.xlane.f32.xlu0 %v721_v24  ;;  %777 = vadd.xlane.f32.xlu1 %v722_v31  ;;  %v725_v24 = vmul.f32 %v693_v16, %v693_v16  ;;  %v726_v31 = vmul.f32 %v694_v18, %v694_v18  ;;  %3704 = vst [vmem:[#allocation34_spill] sm:$0xff] %v2769_v52  ;;  %v692_v62 = vsel %vm48_vm0, 0.0, %v2769_v52  ;;  %2213 = vpow2.f32 %v1789_v13 }
 0x135   :  { %v2687_v37 = vpop.f32.mrb[15].mxu0  ;;  %v2694_v41 = vpop.f32.mrb[15].mxu1  ;;  %3705 = vst [vmem:[#allocation35_spill] sm:$0xff] %v2779_v1  ;;  %v724_v3 = vmul.f32 %v692_v62, %v692_v62  ;;  %v681_v18 = vsel %vm48_vm0, 0.0, %v2779_v1  ;;  %v2798_v40 = vadd.f32 %v2689_v38, %v2581_v26 }
 0x136   :  { %v2194_v43 = vpop.eup %2193  ;;  %v713_v6 = vmul.f32 %v681_v18, %v681_v18  ;;  %v2839_v18 = vadd.f32 %v2581_v26, %v2694_v41 }
 0x137   :  { %v2196_v46 = vpop.eup %2195  ;;  %v506_v7 = vadd.f32 1.0, %v2194_v43  ;;  %3708 = vst [vmem:[#allocation38_spill] sm:$0xff] %v2798_v40 }
 0x138   :  { %739 = vadd.xlane.f32.xlu0 %v703_v50  ;;  %741 = vadd.xlane.f32.xlu1 %v704_v54  ;;  %v508_v50 = vadd.f32 1.0, %v2190_v19  ;;  %v707_v54 = vmul.f32 %v675_v33, %v675_v33  ;;  %v2198_v55 = vpop.eup %2197  ;;  %v522_v14 = vadd.f32 1.0, %v2196_v46  ;;  %v1771_v33 = vmul.f32 -1.442695, %v2685_v34  ;;  %3712 = vst [vmem:[#allocation42_spill] sm:$0xff] %v2839_v18 }
 0x139   :  { %v2200_v61 = vpop.eup %2199  ;;  %v509_v8 = vadd.f32 1.0, %v2198_v55  ;;  %v1787_v46 = vmul.f32 -1.442695, %v2707_v48 }
 0x13a   :  { %2215 = vrcp.f32 %v508_v50  ;;  %v525_v16 = vadd.f32 1.0, %v2200_v61  ;;  %v698_v50 = vsel %vm48_vm0, 0.0, %v2798_v40 }
 0x13b   :  { %2217 = vrcp.f32 %v524_v49  ;;  %v1773_v49 = vmul.f32 -1.442695, %v2639_v4  ;;  %v730_v62 = vmul.f32 %v698_v50, %v698_v50 }
 0x13c   :  { %771 = vadd.xlane.f32.xlu0 %v719_v0  ;;  %773 = vadd.xlane.f32.xlu1 %v720_v5  ;;  %v2202_v0 = vpop.eup %2201  ;;  %2219 = vrcp.f32 %v506_v7 }
 0x13d   :  { %v2204_v5 = vpop.eup %2203  ;;  %v507_v22 = vadd.f32 1.0, %v2202_v0  ;;  %2221 = vrcp.f32 %v522_v14  ;;  %v1774_v14 = vmul.f32 -1.442695, %v2748_v10 }
 0x13e   :  { %v2206_v19 = vpop.eup %2205  ;;  %2223 = vrcp.f32 %v509_v8  ;;  %v1775_v8 = vmul.f32 -1.442695, %v2753_v21 }
 0x13f   :  { %2225 = vrcp.f32 %v525_v16  ;;  %v512_v42 = vadd.f32 1.0, %v2206_v19 }
 0x140   :  { %751 = vadd.xlane.f32.xlu0 %v709_v11  ;;  %753 = vadd.xlane.f32.xlu1 %v710_v12  ;;  %v2783_v11 = vadd.f32 %v2681_v32, %v2581_v26  ;;  %v723_v12 = vmul.f32 %v691_v60, %v691_v60  ;;  %v523_v32 = vadd.f32 1.0, %v2204_v5  ;;  %2227 = vrcp.f32 %v507_v22 }
 0x142   :  { %3706 = vst [vmem:[#allocation36_spill] sm:$0xff] %v2783_v11  ;;  %v682_v20 = vsel %vm48_vm0, 0.0, %v2783_v11  ;;  %2229 = vrcp.f32 %v523_v32 }
 0x143   :  { %v714_v43 = vmul.f32 %v682_v20, %v682_v20  ;;  %2231 = vpow2.f32 %v1771_v33  ;;  %v1790_v20 = vmul.f32 -1.442695, %v2765_v44  ;;  %v1791_v33 = vmul.f32 -1.442695, %v2769_v52 }
 0x144   :  { %783 = vadd.xlane.f32.xlu0 %v725_v24  ;;  %785 = vadd.xlane.f32.xlu1 %v726_v31  ;;  %v2793_v24 = vadd.f32 %v2672_v23, %v2581_v26  ;;  %v2208_v31 = vpop.eup %2207  ;;  %2233 = vrcp.f32 %v512_v42 }
 0x145   :  { %v2210_v23 = vpop.eup %2209  ;;  %v528_v38 = vadd.f32 1.0, %v2208_v31  ;;  %2235 = vpow2.f32 %v1787_v46  ;;  %v1792_v46 = vmul.f32 -1.442695, %v2733_v2  ;;  %v1795_v2 = vmul.f32 -1.442695, %v2839_v18 }
 0x146   :  { %3707 = vst [vmem:[#allocation37_spill] sm:$0xff] %v2793_v24  ;;  %v697_v13 = vsel %vm48_vm0, 0.0, %v2793_v24  ;;  %v2212_v55 = vpop.eup %2211  ;;  %v510_v7 = vadd.f32 1.0, %v2210_v23 }
 0x147   :  { %v729_v60 = vmul.f32 %v697_v13, %v697_v13  ;;  %v2816_v61 = vpop.eup %2213  ;;  %2237 = vrcp.f32 %v528_v38 }
 0x148   :  { %747 = vadd.xlane.f32.xlu0 %v707_v54  ;;  %749 = vadd.xlane.f32.xlu1 %v708_v56  ;;  %v2809_v54 = vadd.f32 %v2581_v26, %v2674_v25  ;;  %v2814_v56 = vadd.f32 %v2581_v26, %v2687_v37  ;;  %v2821_v0 = vpop.eup %2215  ;;  %2239 = vpow2.f32 %v1773_v49 }
 0x149   :  { %v2827_v5 = vpop.eup %2217  ;;  %2241 = vrcp.f32 %v510_v7 }
 0x14a   :  { %3709 = vst [vmem:[#allocation39_spill] sm:$0xff] %v2809_v54  ;;  %3710 = vst [vmem:[#allocation40_spill] sm:$0xff] %v2814_v56  ;;  %v679_v25 = vsel %vm48_vm0, 0.0, %v2809_v54  ;;  %v680_v37 = vsel %vm48_vm0, 0.0, %v2814_v56  ;;  %v2834_v16 = vpop.eup %2219  ;;  %2243 = vpow2.f32 %v1774_v14  ;;  %v1778_v49 = vmul.f32 -1.442695, %v2809_v54 }
 0x14b   :  { %v711_v19 = vmul.f32 %v679_v25, %v679_v25  ;;  %v2841_v22 = vpop.eup %2221  ;;  %v712_v32 = vmul.f32 %v680_v37, %v680_v37  ;;  %2245 = vpow2.f32 %v1775_v8  ;;  %v1780_v8 = vmul.f32 -1.442695, %v2779_v1 }
 0x14c   :  { %779 = vadd.xlane.f32.xlu0 %v723_v12  ;;  %781 = vadd.xlane.f32.xlu1 %v724_v3  ;;  %v2832_v12 = vadd.f32 %v2581_v26, %v2676_v28  ;;  %v1776_v3 = vmul.f32 -1.442695, %v2711_v53  ;;  %v2847_v31 = vpop.eup %2223  ;;  %v696_v26 = vsel %vm48_vm0, 0.0, %v2839_v18 }
 0x14d   :  { %v2853_v41 = vpop.eup %2225  ;;  %v728_v50 = vmul.f32 %v696_v26, %v696_v26 }
 0x14e   :  { %3711 = vst [vmem:[#allocation41_spill] sm:$0xff] %v2832_v12  ;;  %v695_v28 = vsel %vm48_vm0, 0.0, %v2832_v12  ;;  %v2228_v42 = vpop.eup %2227  ;;  %2247 = vpow2.f32 %v1776_v3 }
 0x14f   :  { %v727_v13 = vmul.f32 %v695_v28, %v695_v28  ;;  %v2230_v23 = vpop.eup %2229  ;;  %2249 = vpow2.f32 %v1790_v20 }
 0x150   :  { %759 = vadd.xlane.f32.xlu0 %v713_v6  ;;  %761 = vadd.xlane.f32.xlu1 %v714_v43  ;;  %v526_v6 = vadd.f32 1.0, %v2212_v55  ;;  %v1777_v43 = vmul.f32 -1.442695, %v2718_v58  ;;  %v2232_v38 = vpop.eup %2231  ;;  %2251 = vpow2.f32 %v1791_v33  ;;  %v1779_v55 = vmul.f32 -1.442695, %v2814_v56 }
 0x151   :  { %v511_v14 = vadd.f32 1.0, %v2232_v38 }
 0x152   :  { %2253 = vrcp.f32 %v526_v6  ;;  %v529_v6 = vadd.f32 1.0, %v2816_v61 }
 0x153   :  { %2255 = vpow2.f32 %v1777_v43 }
 0x154   :  { %791 = vadd.xlane.f32.xlu0 %v729_v60  ;;  %793 = vadd.xlane.f32.xlu1 %v730_v62  ;;  %v2858_v60 = vpop.eup %2233  ;;  %v1793_v62 = vmul.f32 -1.442695, %v2737_v9  ;;  %2257 = vpow2.f32 %v1792_v46  ;;  %v2870_v46 = vstv %s3647_s0  ;;  %s2522_s0 = smov [#allocation9]  }
 0x155   :  { %v2236_v7 = vpop.eup %2235  ;;  %2259 = vpow2.f32 %v1778_v49  ;;  %v604_v49 = vmul.f32 %v2228_v42, %v2870_v46  ;;  %v606_v42 = vmul.f32 %v2847_v31, %v2870_v46  ;;  %s1728_s16 = sshll.u32 %s2522_s0, 4  ;;  %s1729_s16 = int_to_ptr.vmem [resolvable:$true] %s1728_s16 }
 0x156   :  { %v2862_v25 = vpop.eup %2237  ;;  %2261 = vpow2.f32 %v1779_v55  ;;  %s2489_s17 = scalar_lea.vmem %s1729_s16, 2048  ;;  %p2494_p3 = scmp.lt.s32.totalorder %s1729_s16, %s1729_s16 }
 0x157   :  { %v2240_v37 = vpop.eup %2239  ;;  %2263 = vpow2.f32 %v1793_v62  ;;  %p2490_p2 = scmp.ne.s32.totalorder %s1729_s16, %s2489_s17  ;;  %p2495_p4 = scmp.lt.s32.totalorder %s2489_s17, %s2489_s17 }
 0x158   :  { %755 = vadd.xlane.f32.xlu0 %v711_v19  ;;  %757 = vadd.xlane.f32.xlu1 %v712_v32  ;;  %v2242_v3 = vpop.eup %2241  ;;  %v527_v19 = vadd.f32 1.0, %v2236_v7  ;;  %v1781_v32 = vmul.f32 -1.442695, %v2783_v11  ;;  %v513_v33 = vadd.f32 1.0, %v2240_v37  ;;  %2265 = vrcp.f32 %v511_v14 }
 0x159   :  { %v2244_v20 = vpop.eup %2243  ;;  %2267 = vpow2.f32 %v1780_v8  ;;  %v603_v14 = vmul.f32 %v2834_v16, %v2870_v46  ;;  %p2496_p5 = por %p2495_p4, %p2494_p3 }
 0x15a   :  { %v2246_v28 = vpop.eup %2245  ;;  %2269 = vrcp.f32 %v527_v19  ;;  %v620_v19 = vmul.f32 %v2230_v23, %v2870_v46  ;;  %v605_v23 = vmul.f32 %v2821_v0, %v2870_v46  ;;  %v607_v0 = vmul.f32 %v2242_v3, %v2870_v46 }
 0x15b   :  { %v2248_v26 = vpop.eup %2247  ;;  %v515_v38 = vadd.f32 1.0, %v2246_v28  ;;  %2271 = vpow2.f32 %v1781_v32  ;;  %v2876_v28 = vadd.f32 1.1, %v604_v49  ;;  %p2497_p6 = pnand %p2496_p5, %p2490_p2 }
 0x15c   :  { %787 = vadd.xlane.f32.xlu0 %v727_v13  ;;  %789 = vadd.xlane.f32.xlu1 %v728_v50  ;;  %v2250_v43 = vpop.eup %2249  ;;  %v514_v13 = vadd.f32 1.0, %v2244_v20  ;;  %2273 = vrcp.f32 %v513_v33  ;;  %v516_v7 = vadd.f32 1.0, %v2248_v26  ;;  %v619_v26 = vmul.f32 %v2841_v22, %v2870_v46 }
 0x15d   :  { %v2252_v50 = vpop.eup %2251  ;;  %2275 = vrcp.f32 %v529_v6  ;;  %v530_v61 = vadd.f32 1.0, %v2250_v43  ;;  %v2882_v43 = vadd.f32 1.1, %v603_v14  ;;  %v622_v22 = vmul.f32 %v2853_v41, %v2870_v46 }
 0x15e   :  { %v2254_v55 = vpop.eup %2253  ;;  %2277 = vrcp.f32 %v514_v13  ;;  %v531_v8 = vadd.f32 1.0, %v2252_v50 }
 0x15f   :  { %v2256_v62 = vpop.eup %2255  ;;  %2279 = vrcp.f32 %v515_v38  ;;  %v2886_v38 = vadd.f32 1.1, %v620_v19  ;;  %v2897_v19 = vadd.f32 1.1, %v605_v23 }
 0x160   :  { %v2258_v37 = vpop.eup %2257  ;;  %2281 = vrcp.f32 %v516_v7  ;;  %v517_v33 = vadd.f32 1.0, %v2256_v62  ;;  %v2095_v7 = vpack.i.bf16 %v2876_v28, %v2882_v43  ;;  %v2890_v62 = vadd.f32 1.1, %v606_v42 }
 0x161   :  { %v2260_v20 = vpop.eup %2259  ;;  %v532_v16 = vadd.f32 1.0, %v2258_v37  ;;  %2283 = vrcp.f32 %v530_v61  ;;  %v2894_v37 = vadd.f32 1.1, %v619_v26  ;;  %v621_v42 = vmul.f32 %v2827_v5, %v2870_v46 }
 0x162   :  { %v2262_v32 = vpop.eup %2261  ;;  %2285 = vrcp.f32 %v531_v8  ;;  %v518_v50 = vadd.f32 1.0, %v2260_v20  ;;  %v2084_v3 = vpack.i.bf16 %v2890_v62, %v2897_v19  ;;  %v2906_v26 = vadd.f32 1.1, %v622_v22 }
 0x163   :  { %v2264_v6 = vpop.eup %2263  ;;  %v519_v49 = vadd.f32 1.0, %v2262_v32  ;;  %2287 = vrcp.f32 %v517_v33  ;;  %v2100_v41 = vpack.i.bf16 %v2886_v38, %v2894_v37 }
 0x164   :  { %v2266_v13 = vpop.eup %2265  ;;  %v533_v14 = vadd.f32 1.0, %v2264_v6  ;;  %2289 = vrcp.f32 %v532_v16  ;;  %v623_v6 = vmul.f32 %v2254_v55, %v2870_v46 }
 0x165   :  { %v2268_v31 = vpop.eup %2267  ;;  %v608_v20 = vmul.f32 %v2266_v13, %v2870_v46  ;;  %2291 = vrcp.f32 %v518_v50  ;;  %v2909_v13 = vadd.f32 1.1, %v607_v0 }
 0x166   :  { %v2270_v61 = vpop.eup %2269  ;;  %v520_v54 = vadd.f32 1.0, %v2268_v31  ;;  %2293 = vrcp.f32 %v519_v49  ;;  %v2914_v49 = vadd.f32 1.1, %v621_v42  ;;  %v2923_v0 = vadd.f32 1.1, %v623_v6 }
 0x167   :  { %v2272_v8 = vpop.eup %2271  ;;  %2295 = vrcp.f32 %v533_v14  ;;  %v624_v5 = vmul.f32 %v2270_v61, %v2870_v46  ;;  %v2912_v31 = vadd.f32 1.1, %v608_v20 }
 0x168   :  { %v2274_v32 = vpop.eup %2273  ;;  %v521_v23 = vadd.f32 1.0, %v2272_v8  ;;  %2297 = vrcp.f32 %v520_v54  ;;  %v2089_v61 = vpack.i.bf16 %v2906_v26, %v2914_v49 }
 0x169   :  { %v2276_v33 = vpop.eup %2275  ;;  %v610_v22 = vmul.f32 %v2274_v32, %v2870_v46  ;;  %v2115_v14 = vpack.i.bf16 %v2912_v31, %v2909_v13  ;;  %v2925_v20 = vadd.f32 1.1, %v624_v5 }
 0x16a   :  { %v2278_v16 = vpop.eup %2277  ;;  %2299 = vrcp.f32 %v521_v23 }
 0x16b   :  { %v2280_v50 = vpop.eup %2279  ;;  %v611_v42 = vmul.f32 %v2278_v16, %v2870_v46  ;;  %v2931_v54 = vadd.f32 1.1, %v610_v22  ;;  %v2120_v23 = vpack.i.bf16 %v2925_v20, %v2923_v0 }
 0x16c   :  { %v2282_v55 = vpop.eup %2281 }
 0x16d   :  { %2096 = vperm.xlu1 %2094, %v2095_v7   ;;  %v609_v7 = vmul.f32 %v2858_v60, %v2870_v46  ;;  %v2284_v56 = vpop.eup %2283  ;;  %v612_v60 = vmul.f32 %v2280_v50, %v2870_v46  ;;  %v2940_v50 = vadd.f32 1.1, %v611_v42  ;;  %v613_v11 = vmul.f32 %v2282_v55, %v2870_v46 }
 0x16e   :  { %v2286_v8 = vpop.eup %2285  ;;  %v627_v22 = vmul.f32 %v2284_v56, %v2870_v46 }
 0x16f   :  { %v2929_v32 = vadd.f32 1.1, %v609_v7  ;;  %v2288_v6 = vpop.eup %2287  ;;  %v2942_v7 = vadd.f32 1.1, %v612_v60  ;;  %v2962_v55 = vadd.f32 1.1, %v613_v11 }
 0x170   :  { %v2290_v1 = vpop.eup %2289  ;;  %v614_v44 = vmul.f32 %v2288_v6, %v2870_v46  ;;  %v2956_v60 = vadd.f32 1.1, %v627_v22  ;;  %v1796_v22 = vmul.f32 -1.442695, %v2793_v24  ;;  %v1797_v24 = vmul.f32 -1.442695, %v2798_v40 }
 0x171   :  { %2101 = vperm.xlu1 %2094, %v2100_v41   ;;  %v625_v41 = vmul.f32 %v2862_v25, %v2870_v46  ;;  %v2105_v16 = vpack.i.bf16 %v2931_v54, %v2929_v32  ;;  %v2292_v5 = vpop.eup %2291  ;;  %v2135_v42 = vpack.i.bf16 %v2942_v7, %v2940_v50 }
 0x172   :  { %2085 = vperm.xlu0 %2083, %v2084_v3   ;;  %v626_v3 = vmul.f32 %v2276_v33, %v2870_v46  ;;  %v2294_v25 = vpop.eup %2293  ;;  %v2964_v6 = vadd.f32 1.1, %v614_v44  ;;  %2301 = vpow2.f32 %v1796_v22 }
 0x173   :  { %v2946_v33 = vadd.f32 1.1, %v625_v41  ;;  %v2296_v52 = vpop.eup %2295  ;;  %v615_v41 = vmul.f32 %v2292_v5, %v2870_v46 }
 0x174   :  { %v630_v10 = vmul.f32 %v2296_v52, %v2870_v46  ;;  %v2125_v5 = vpack.i.bf16 %v2964_v6, %v2962_v55 }
 0x175   :  { %2116 = vperm.xlu1 %2094, %v2115_v14   ;;  %v628_v14 = vmul.f32 %v2286_v8, %v2870_v46 }
 0x176   :  { %2090 = vperm.xlu0 %2083, %v2089_v61   ;;  %v2948_v61 = vadd.f32 1.1, %v626_v3  ;;  %v616_v3 = vmul.f32 %v2294_v25, %v2870_v46  ;;  %v1794_v25 = vmul.f32 -1.442695, %v2832_v12  ;;  %v2980_v52 = vadd.f32 1.1, %v630_v10 }
 0x177   :  { %v2958_v8 = vadd.f32 1.1, %v628_v14 }
 0x178   :  { %v2110_v56 = vpack.i.bf16 %v2948_v61, %v2946_v33  ;;  %v2976_v11 = vadd.f32 1.1, %v616_v3  ;;  %2303 = vpow2.f32 %v1794_v25 }
 0x179   :  { %2121 = vperm.xlu1 %2094, %v2120_v23   ;;  %v2298_v23 = vpop.eup %2297  ;;  %v2140_v14 = vpack.i.bf16 %v2958_v8, %v2956_v60  ;;  %2305 = vpow2.f32 %v1797_v24  ;;  %v796_v24 = vmul.f32 %v2876_v28, %v2876_v28 }
 0x17a   :  { %2106 = vperm.xlu0 %2083, %v2105_v16   ;;  %v629_v16 = vmul.f32 %v2290_v1, %v2870_v46  ;;  %v2300_v21 = vpop.eup %2299  ;;  %v617_v1 = vmul.f32 %v2298_v23, %v2870_v46  ;;  %2307 = vpow2.f32 %v1795_v2  ;;  %v795_v2 = vmul.f32 %v2882_v43, %v2882_v43 }
 0x17b   :  { %v813_v43 = vmul.f32 %v2914_v49, %v2914_v49 }
 0x17c   :  { %v2978_v44 = vadd.f32 1.1, %v629_v16  ;;  %v2990_v10 = vadd.f32 1.1, %v617_v1  ;;  %v2302_v23 = vpop.eup %2301  ;;  %v812_v1 = vmul.f32 %v2886_v38, %v2886_v38  ;;  %v814_v38 = vmul.f32 %v2906_v26, %v2906_v26 }
 0x17d   :  { %2136 = vperm.xlu1 %2094, %v2135_v42   ;;  %v2974_v42 = vadd.f32 1.1, %v615_v41  ;;  %v536_v18 = vadd.f32 1.0, %v2302_v23 }
 0x17e   :  { %2111 = vperm.xlu0 %2083, %v2110_v56   ;;  %v618_v56 = vmul.f32 %v2300_v21, %v2870_v46  ;;  %v2130_v3 = vpack.i.bf16 %v2980_v52, %v2978_v44 }
 0x17f   :  { %v2150_v41 = vpack.i.bf16 %v2976_v11, %v2974_v42  ;;  %2309 = vrcp.f32 %v536_v18  ;;  %v799_v18 = vmul.f32 %v2909_v13, %v2909_v13  ;;  %v3024_v13 = vadd.f32 -1.0, %v812_v1 }
 0x180   :  { %v2992_v16 = vadd.f32 1.1, %v618_v56  ;;  %v811_v56 = vmul.f32 %v2894_v37, %v2894_v37  ;;  %v3044_v1 = vadd.f32 -1.0, %v814_v38  ;;  %v818_v38 = vmul.f32 %v2948_v61, %v2948_v61 }
 0x181   :  { %2141 = vperm.xlu1 %2094, %v2140_v14   ;;  %v806_v61 = vmul.f32 %v2964_v6, %v2964_v6  ;;  %v807_v6 = vmul.f32 %v2974_v42, %v2974_v42  ;;  %vm980_vm13 = vcmp.eq.f32.partialorder %v3024_v13, inf  ;;  %vm982_vm14 = vcmp.eq.f32.partialorder %v3024_v13, 0.0 }
 0x182   :  { %2126 = vperm.xlu0 %2083, %v2125_v5   ;;  %v2145_v21 = vpack.i.bf16 %v2992_v16, %v2990_v10  ;;  %v2304_v14 = vpop.eup %2303  ;;  %v3026_v23 = vadd.f32 -1.0, %v811_v56  ;;  %vm994_vm9 = vcmp.eq.f32.partialorder %v3044_v1, inf  ;;  %vm996_vm10 = vcmp.eq.f32.partialorder %v3044_v1, 0.0 }
 0x183   :  { %v2306_v5 = vpop.eup %2305  ;;  %v534_v40 = vadd.f32 1.0, %v2304_v14 }
 0x184   :  { %v2308_v12 = vpop.eup %2307  ;;  %v537_v22 = vadd.f32 1.0, %v2306_v5  ;;  %vm973_vm7 = vcmp.eq.f32.partialorder %v3026_v23, inf  ;;  %vm975_vm8 = vcmp.eq.f32.partialorder %v3026_v23, 0.0 }
 0x185   :  { %2151 = vperm.xlu1 %2094, %v2150_v41   ;;  %v535_v25 = vadd.f32 1.0, %v2308_v12  ;;  %2311 = vrcp.f32 %v534_v40  ;;  %v797_v41 = vmul.f32 %v2897_v19, %v2897_v19  ;;  %v798_v40 = vmul.f32 %v2890_v62, %v2890_v62 }
 0x186   :  { %2131 = vperm.xlu0 %2083, %v2130_v3   ;;  %2313 = vrcp.f32 %v537_v22  ;;  %v800_v12 = vmul.f32 %v2912_v31, %v2912_v31  ;;  %v3016_v3 = vadd.f32 -1.0, %v796_v24  ;;  %v3018_v19 = vadd.f32 -1.0, %v795_v2 }
 0x187   :  { %2315 = vrcp.f32 %v535_v25  ;;  %v816_v62 = vmul.f32 %v2925_v20, %v2925_v20  ;;  %v815_v31 = vmul.f32 %v2923_v0, %v2923_v0  ;;  %v3028_v49 = vadd.f32 -1.0, %v797_v41 }
 0x188   :  { %v3030_v14 = vadd.f32 -1.0, %v798_v40  ;;  %v3032_v5 = vadd.f32 -1.0, %v800_v12  ;;  %v3034_v22 = vadd.f32 -1.0, %v799_v18  ;;  %v801_v20 = vmul.f32 %v2929_v32, %v2929_v32 }
 0x189   :  { %v2310_v28 = vpop.eup %2309  ;;  %v802_v0 = vmul.f32 %v2931_v54, %v2931_v54  ;;  %v3042_v2 = vadd.f32 -1.0, %v813_v43  ;;  %v3047_v41 = vadd.f32 -1.0, %v816_v62  ;;  %v3049_v40 = vadd.f32 -1.0, %v815_v31 }
 0x18a   :  { %2146 = vperm.xlu0 %2083, %v2145_v21   ;;  %v633_v25 = vmul.f32 %v2310_v28, %v2870_v46  ;;  %v804_v32 = vmul.f32 %v2942_v7, %v2942_v7  ;;  %v803_v54 = vmul.f32 %v2940_v50, %v2940_v50  ;;  %v817_v18 = vmul.f32 %v2946_v33, %v2946_v33 }
 0x18b   :  { %2317 = vrsqrt.f32 %v3028_v49  ;;  %v3059_v28 = vadd.f32 -1.0, %v801_v20  ;;  %v3061_v43 = vadd.f32 -1.0, %v802_v0  ;;  %v819_v7 = vmul.f32 %v2956_v60, %v2956_v60 }
 0x18c   :  { %v820_v50 = vmul.f32 %v2958_v8, %v2958_v8  ;;  %2319 = vrsqrt.f32 %v3042_v2  ;;  %v805_v62 = vmul.f32 %v2962_v55, %v2962_v55  ;;  %v3083_v31 = vadd.f32 -1.0, %v804_v32 }
 0x18d   :  { %2321 = vrsqrt.f32 %v3018_v19  ;;  %v3089_v8 = vadd.f32 -1.0, %v818_v38  ;;  %v3091_v20 = vadd.f32 -1.0, %v819_v7  ;;  %v808_v55 = vmul.f32 %v2976_v11, %v2976_v11 }
 0x18e   :  { %v3109_v11 = vadd.f32 -1.0, %v806_v61  ;;  %2323 = vrsqrt.f32 %v3026_v23  ;;  %vm875_vm1 = vcmp.eq.f32.partialorder %v3028_v49, inf  ;;  %vm877_vm2 = vcmp.eq.f32.partialorder %v3028_v49, 0.0 }
 0x18f   :  { %v2312_v37 = vpop.eup %2311  ;;  %2325 = vrsqrt.f32 %v3044_v1  ;;  %vm987_vm3 = vcmp.eq.f32.partialorder %v3042_v2, inf  ;;  %vm861_vm4 = vcmp.eq.f32.partialorder %v3018_v19, inf  ;;  %vm989_vm5 = vcmp.eq.f32.partialorder %v3042_v2, 0.0 }
 0x190   :  { %v2314_v21 = vpop.eup %2313  ;;  %v631_v24 = vmul.f32 %v2312_v37, %v2870_v46  ;;  %v3067_v37 = vadd.f32 1.1, %v633_v25  ;;  %2327 = vrsqrt.f32 %v3030_v14  ;;  %vm863_vm6 = vcmp.eq.f32.partialorder %v3018_v19, 0.0 }
 0x191   :  { %v2316_v26 = vpop.eup %2315  ;;  %v634_v56 = vmul.f32 %v2314_v21, %v2870_v46  ;;  %v3085_v21 = vadd.f32 -1.0, %v803_v54  ;;  %v3107_v54 = vadd.f32 -1.0, %v805_v62  ;;  %2329 = vrsqrt.f32 %v3024_v13 }
 0x192   :  { %v632_v12 = vmul.f32 %v2316_v26, %v2870_v46  ;;  %v3069_v46 = vadd.f32 1.1, %v631_v24  ;;  %v3087_v26 = vadd.f32 -1.0, %v817_v18  ;;  %v825_v0 = vmul.f32 %v3067_v37, %v3067_v37 }
 0x193   :  { %v3074_v33 = vadd.f32 1.1, %v634_v56  ;;  %v3101_v24 = vadd.f32 -1.0, %v820_v50  ;;  %v821_v56 = vmul.f32 %v2978_v44, %v2978_v44  ;;  %v822_v18 = vmul.f32 %v2980_v52, %v2980_v52 }
 0x194   :  { %v3081_v60 = vadd.f32 1.1, %v632_v12  ;;  %v823_v25 = vmul.f32 %v3069_v46, %v3069_v46  ;;  %v3117_v44 = vadd.f32 -1.0, %v808_v55  ;;  %v3119_v50 = vadd.f32 -1.0, %v807_v6 }
 0x195   :  { %v826_v12 = vmul.f32 %v3074_v33, %v3074_v33  ;;  %v2318_v61 = vpop.eup %2317  ;;  %v3122_v9 = vadd.f32 -1.0, %v825_v0  ;;  %v3126_v58 = vadd.f32 -1.0, %v821_v56  ;;  %v809_v55 = vmul.f32 %v2990_v10, %v2990_v10 }
 0x196   :  { %v824_v42 = vmul.f32 %v3081_v60, %v3081_v60  ;;  %v3124_v53 = vadd.f32 -1.0, %v823_v25  ;;  %v3135_v29 = vadd.f32 -1.0, %v822_v18  ;;  %v874_v56 = vmul.f32 %v2318_v61, %v3028_v49 }
 0x197   :  { %v3129_v52 = vadd.f32 -1.0, %v826_v12  ;;  %v878_v12 = vand.u32 2147483648, %v3028_v49  ;;  %v990_v10 = vand.u32 2147483648, %v3042_v2  ;;  %vm882_vm11 = vcmp.eq.f32.partialorder %v3030_v14, inf }
 0x198   :  { %v876_v45 = vsel %vm875_vm1, %v3028_v49, %v874_v56  ;;  %vm884_vm12 = vcmp.eq.f32.partialorder %v3030_v14, 0.0  ;;  %vm868_vm15 = vcmp.eq.f32.partialorder %v3016_v3, inf  ;;  %vm870_vm1 = vcmp.eq.f32.partialorder %v3016_v3, 0.0 }
 0x1ad   :  { %v768_v32 = vpop.xlane.xlu0 %767  ;;  %v736_v7 = vpop.xlane.xlu1 %735 }
 0x1ae   :  { %v1101_v38 = vmax.f32 %v768_v32, 1e-08  ;;  %v1085_v62 = vmax.f32 %v736_v7, 1e-08  ;;  %v2320_v32 = vpop.eup %2319  ;;  %v3133_v7 = vadd.f32 -1.0, %v824_v42  ;;  %v3146_v42 = vadd.f32 -1.0, %v809_v55 }
 0x1af   :  { %v2322_v25 = vpop.eup %2321 }
 0x1b0   :  { %2331 = vrsqrt.f32 %v1085_v62  ;;  %v2324_v4 = vpop.eup %2323 }
 0x1b1   :  { %v732_v34 = vpop.xlane.xlu0 %731  ;;  %2333 = vrsqrt.f32 %v1101_v38  ;;  %v738_v0 = vpop.xlane.xlu1 %737  ;;  %v864_v38 = vand.u32 2147483648, %v3018_v19  ;;  %v972_v17 = vmul.f32 %v2324_v4, %v3026_v23 }
 0x1b2   :  { %v1083_v6 = vmax.f32 %v732_v34, 1e-08  ;;  %v810_v34 = vmul.f32 %v2992_v16, %v2992_v16  ;;  %v986_v16 = vmul.f32 %v2320_v32, %v3042_v2  ;;  %v1086_v55 = vmax.f32 %v738_v0, 1e-08  ;;  %v2326_v48 = vpop.eup %2325 }
 0x1b3   :  { %v976_v32 = vand.u32 2147483648, %v3026_v23  ;;  %v997_v0 = vand.u32 2147483648, %v3044_v1  ;;  %v993_v39 = vmul.f32 %v2326_v48, %v3044_v1  ;;  %v983_v48 = vand.u32 2147483648, %v3024_v13 }
 0x1b4   :  { %2335 = vrsqrt.f32 %v1083_v6  ;;  %v860_v6 = vmul.f32 %v2322_v25, %v3018_v19  ;;  %v3159_v15 = vadd.f32 -1.0, %v810_v34  ;;  %v2328_v25 = vpop.eup %2327  ;;  %v879_v34 = vsel %vm877_vm2, %v878_v12, %v876_v45 }
 0x1b5   :  { %v764_v18 = vpop.xlane.xlu0 %763  ;;  %2337 = vrsqrt.f32 %v3016_v3  ;;  %v770_v62 = vpop.xlane.xlu1 %769  ;;  %v885_v45 = vand.u32 2147483648, %v3030_v14  ;;  %vm903_vm2 = vcmp.eq.f32.partialorder %v3059_v28, inf }
 0x1b6   :  { %v1099_v61 = vmax.f32 %v764_v18, 1e-08  ;;  %2339 = vrsqrt.f32 %v3059_v28  ;;  %v1102_v63 = vmax.f32 %v770_v62, 1e-08  ;;  %v2330_v56 = vpop.eup %2329 }
 0x1b7   :  { %2341 = vrsqrt.f32 %v3089_v8 }
 0x1b8   :  { %2343 = vrsqrt.f32 %v1099_v61  ;;  %v988_v61 = vsel %vm987_vm3, %v3042_v2, %v986_v16  ;;  %vm1022_vm3 = vcmp.eq.f32.partialorder %v3089_v8, inf }
 0x1b9   :  { %2345 = vrsqrt.f32 %v1102_v63  ;;  %v734_v18 = vpop.xlane.xlu0 %733  ;;  %v766_v62 = vpop.xlane.xlu1 %765  ;;  %v862_v63 = vsel %vm861_vm4, %v3018_v19, %v860_v6  ;;  %vm905_vm4 = vcmp.eq.f32.partialorder %v3059_v28, 0.0 }
 0x1ba   :  { %v2332_v57 = vpop.eup %2331  ;;  %2347 = vrsqrt.f32 %v1086_v55  ;;  %v1100_v36 = vmax.f32 %v766_v62, 1e-08  ;;  %v1084_v59 = vmax.f32 %v734_v18, 1e-08  ;;  %v865_v4 = vsel %vm863_vm6, %v864_v38, %v862_v63 }
 0x1bb   :  { %v2334_v51 = vpop.eup %2333  ;;  %v1149_v27 = vmul.f32 %v2332_v57, %v879_v34  ;;  %2349 = vrsqrt.f32 %v3087_v26  ;;  %v991_v57 = vsel %vm989_vm5, %v990_v10, %v988_v61  ;;  %v881_v55 = vmul.f32 %v2328_v25, %v3030_v14 }
 0x1bc   :  { %2351 = vrsqrt.f32 %v1100_v36  ;;  %v974_v38 = vsel %vm973_vm7, %v3026_v23, %v972_v17  ;;  %v1165_v10 = vmul.f32 %v2334_v51, %v991_v57  ;;  %v979_v25 = vmul.f32 %v2330_v56, %v3024_v13 }
 0x1bd   :  { %v744_v12 = vpop.xlane.xlu0 %743  ;;  %v3185_v16 = vpop.xlane.xlu1 %745  ;;  %1191 = vperm.xlu1 %2094, %v1149_v27   ;;  %2353 = vrsqrt.f32 %v3034_v22  ;;  %v995_v27 = vsel %vm994_vm9, %v3044_v1, %v993_v39  ;;  %v871_v18 = vand.u32 2147483648, %v3016_v3  ;;  %v906_v17 = vand.u32 2147483648, %v3059_v28 }
 0x1be   :  { %v2336_v49 = vpop.eup %2335  ;;  %2355 = vrsqrt.f32 %v1084_v59  ;;  %v1089_v19 = vmax.f32 %v744_v12, 1e-08  ;;  %v977_v56 = vsel %vm975_vm8, %v976_v32, %v974_v38  ;;  %v998_v34 = vsel %vm996_vm10, %v997_v0, %v995_v27 }
 0x1bf   :  { %v1147_v6 = vmul.f32 %v2336_v49, %v865_v4  ;;  %v2338_v36 = vpop.eup %2337  ;;  %2357 = vrsqrt.f32 %v3047_v41  ;;  %v883_v61 = vsel %vm882_vm11, %v3030_v14, %v881_v55  ;;  %vm1024_vm5 = vcmp.eq.f32.partialorder %v3089_v8, 0.0 }
 0x1c0   :  { %v2340_v2 = vpop.eup %2339  ;;  %2359 = vrsqrt.f32 %v3049_v40  ;;  %v867_v63 = vmul.f32 %v2338_v36, %v3016_v3  ;;  %v981_v1 = vsel %vm980_vm13, %v3024_v13, %v979_v25  ;;  %v1025_v32 = vand.u32 2147483648, %v3089_v8 }
 0x1c1   :  { %1181 = vperm.xlu0 %2083, %v1147_v6   ;;  %v2342_v62 = vpop.eup %2341  ;;  %v776_v59 = vpop.xlane.xlu0 %775  ;;  %1271 = vperm.xlu1 %2094, %v1165_v10   ;;  %2361 = vrsqrt.f32 %v1089_v19  ;;  %vm1015_vm6 = vcmp.eq.f32.partialorder %v3087_v26, inf  ;;  %vm1017_vm7 = vcmp.eq.f32.partialorder %v3087_v26, 0.0  ;;  %v1018_v55 = vand.u32 2147483648, %v3087_v26 }
 0x1c2   :  { %v2344_v39 = vpop.eup %2343  ;;  %v778_v51 = vpop.xlane.xlu1 %777  ;;  %v1105_v4 = vmax.f32 %v776_v59, 1e-08  ;;  %vm889_vm8 = vcmp.eq.f32.partialorder %v3034_v22, inf  ;;  %v892_v36 = vand.u32 2147483648, %v3034_v22  ;;  %v886_v27 = vsel %vm884_vm12, %v885_v45, %v883_v61 }
 0x1c3   :  { %v2346_v49 = vpop.eup %2345  ;;  %v1106_v12 = vmax.f32 %v778_v51, 1e-08  ;;  %v1163_v57 = vmul.f32 %v2344_v39, %v977_v56  ;;  %v902_v10 = vmul.f32 %v2340_v2, %v3059_v28  ;;  %v1021_v25 = vmul.f32 %v2342_v62, %v3089_v8 }
 0x1c4   :  { %v1166_v23 = vmul.f32 %v2346_v49, %v998_v34  ;;  %v2348_v0 = vpop.eup %2347  ;;  %v984_v51 = vsel %vm982_vm14, %v983_v48, %v981_v1  ;;  %v869_v56 = vsel %vm868_vm15, %v3016_v3, %v867_v63  ;;  %vm1008_vm9 = vcmp.eq.f32.partialorder %v3047_v41, inf }
 0x1c5   :  { %2363 = vrsqrt.f32 %v1106_v12  ;;  %v740_v6 = vpop.xlane.xlu0 %739  ;;  %v2350_v19 = vpop.eup %2349  ;;  %1261 = vperm.xlu1 %2094, %v1163_v57   ;;  %v1150_v45 = vmul.f32 %v2348_v0, %v886_v27  ;;  %vm891_vm10 = vcmp.eq.f32.partialorder %v3034_v22, 0.0  ;;  %v1011_v13 = vand.u32 2147483648, %v3047_v41 }
 0x1c6   :  { %v3226_v38 = vpop.xlane.xlu1 %741  ;;  %1276 = vperm.xlu0 %2083, %v1166_v23   ;;  %2365 = vrsqrt.f32 %v3109_v11  ;;  %v2352_v59 = vpop.eup %2351  ;;  %v1087_v39 = vmax.f32 %v740_v6, 1e-08  ;;  %v1014_v61 = vmul.f32 %v2350_v19, %v3087_v26  ;;  %vm1001_vm11 = vcmp.eq.f32.partialorder %v3049_v40, inf }
 0x1c7   :  { %2367 = vrsqrt.f32 %v1105_v4  ;;  %v2354_v14 = vpop.eup %2353  ;;  %v1164_v34 = vmul.f32 %v2352_v59, %v984_v51  ;;  %v872_v49 = vsel %vm870_vm1, %v871_v18, %v869_v56  ;;  %v904_v12 = vsel %vm903_vm2, %v3059_v28, %v902_v10 }
 0x1c8   :  { %2369 = vrsqrt.f32 %v3061_v43  ;;  %v2356_v2 = vpop.eup %2355  ;;  %v1023_v4 = vsel %vm1022_vm3, %v3089_v8, %v1021_v25  ;;  %vm1010_vm12 = vcmp.eq.f32.partialorder %v3047_v41, 0.0  ;;  %v888_v0 = vmul.f32 %v2354_v14, %v3034_v22 }
 0x1c9   :  { %v772_v62 = vpop.xlane.xlu0 %771  ;;  %2371 = vrsqrt.f32 %v3135_v29  ;;  %v2358_v48 = vpop.eup %2357  ;;  %1196 = vperm.xlu1 %2094, %v1150_v45   ;;  %vm1003_vm13 = vcmp.eq.f32.partialorder %v3049_v40, 0.0  ;;  %v1148_v3 = vmul.f32 %v2356_v2, %v872_v49  ;;  %v1004_v18 = vand.u32 2147483648, %v3049_v40 }
 0x1ca   :  { %v774_v63 = vpop.xlane.xlu1 %773  ;;  %1266 = vperm.xlu0 %2083, %v1164_v34   ;;  %2373 = vrsqrt.f32 %v3032_v5  ;;  %v2360_v57 = vpop.eup %2359  ;;  %v1103_v1 = vmax.f32 %v772_v62, 1e-08  ;;  %vm938_vm14 = vcmp.eq.f32.partialorder %v3109_v11, inf  ;;  %v907_v27 = vsel %vm905_vm4, %v906_v17, %v904_v12 }
 0x1cb   :  { %2375 = vrsqrt.f32 %v1087_v39  ;;  %v1104_v23 = vmax.f32 %v774_v63, 1e-08  ;;  %v2362_v6 = vpop.eup %2361  ;;  %v1016_v10 = vsel %vm1015_vm6, %v3087_v26, %v1014_v61  ;;  %v941_v25 = vand.u32 2147483648, %v3109_v11 }
 0x1cc   :  { %2377 = vrsqrt.f32 %v3083_v31  ;;  %v1026_v39 = vsel %vm1024_vm5, %v1025_v32, %v1023_v4  ;;  %v1007_v51 = vmul.f32 %v2358_v48, %v3047_v41  ;;  %v1000_v56 = vmul.f32 %v2360_v57, %v3049_v40 }
 0x1cd   :  { %2379 = vrsqrt.f32 %v1104_v23  ;;  %v3266_v19 = vpop.xlane.xlu0 %751  ;;  %1186 = vperm.xlu1 %2094, %v1148_v3   ;;  %v1090_v28 = vmax.f32 %v3185_v16, 1e-08  ;;  %v890_v45 = vsel %vm889_vm8, %v3034_v22, %v888_v0  ;;  %v1153_v2 = vmul.f32 %v2362_v6, %v907_v27 }
 0x1ce   :  { %v754_v59 = vpop.xlane.xlu1 %753  ;;  %2381 = vrsqrt.f32 %v3107_v54  ;;  %v1019_v8 = vsel %vm1017_vm7, %v1018_v55, %v1016_v10  ;;  %vm940_vm15 = vcmp.eq.f32.partialorder %v3109_v11, 0.0  ;;  %vm910_vm1 = vcmp.eq.f32.partialorder %v3061_v43, inf }
 0x1cf   :  { %v2364_v14 = vpop.eup %2363  ;;  %2383 = vrsqrt.f32 %v1103_v1  ;;  %v1094_v17 = vmax.f32 %v754_v59, 1e-08  ;;  %v913_v61 = vand.u32 2147483648, %v3061_v43  ;;  %vm1050_vm2 = vcmp.eq.f32.partialorder %v3135_v29, inf }
 0x1d0   :  { %v2366_v34 = vpop.eup %2365  ;;  %v1170_v62 = vmul.f32 %v2364_v14, %v1026_v39  ;;  %2385 = vrsqrt.f32 %v3101_v24  ;;  %v893_v26 = vsel %vm891_vm10, %v892_v36, %v890_v45  ;;  %v1009_v55 = vsel %vm1008_vm9, %v3047_v41, %v1007_v51 }
 0x1d1   :  { %v2368_v32 = vpop.eup %2367  ;;  %2387 = vrsqrt.f32 %v1094_v17  ;;  %v3291_v16 = vpop.xlane.xlu0 %783  ;;  %1211 = vperm.xlu1 %2094, %v1153_v2   ;;  %v1002_v49 = vsel %vm1001_vm11, %v3049_v40, %v1000_v56  ;;  %v1088_v4 = vmax.f32 %v3226_v38, 1e-08  ;;  %v937_v23 = vmul.f32 %v2366_v34, %v3109_v11 }
 0x1d2   :  { %v2370_v48 = vpop.eup %2369  ;;  %v786_v63 = vpop.xlane.xlu1 %785  ;;  %1296 = vperm.xlu0 %2083, %v1170_v62   ;;  %2389 = vrsqrt.f32 %v3126_v58  ;;  %v1169_v22 = vmul.f32 %v2368_v32, %v1019_v8  ;;  %vm912_vm3 = vcmp.eq.f32.partialorder %v3061_v43, 0.0  ;;  %vm1052_vm4 = vcmp.eq.f32.partialorder %v3135_v29, 0.0 }
 0x1d3   :  { %v2372_v12 = vpop.eup %2371  ;;  %2391 = vrsqrt.f32 %v1090_v28  ;;  %v1110_v57 = vmax.f32 %v786_v63, 1e-08  ;;  %v1053_v36 = vand.u32 2147483648, %v3135_v29  ;;  %vm896_vm5 = vcmp.eq.f32.partialorder %v3032_v5, inf }
 0x1d4   :  { %v2374_v1 = vpop.eup %2373  ;;  %2393 = vrsqrt.f32 %v3159_v15  ;;  %v1012_v38 = vsel %vm1010_vm12, %v1011_v13, %v1009_v55  ;;  %v899_v6 = vand.u32 2147483648, %v3032_v5  ;;  %vm924_vm6 = vcmp.eq.f32.partialorder %v3083_v31, inf }
 0x1d5   :  { %v2376_v0 = vpop.eup %2375  ;;  %2395 = vrsqrt.f32 %v1110_v57  ;;  %v3314_v3 = vpop.xlane.xlu0 %747  ;;  %1291 = vperm.xlu1 %2094, %v1169_v22   ;;  %v1005_v59 = vsel %vm1003_vm13, %v1004_v18, %v1002_v49  ;;  %v909_v39 = vmul.f32 %v2370_v48, %v3061_v43  ;;  %vm926_vm7 = vcmp.eq.f32.partialorder %v3083_v31, 0.0 }
 0x1d6   :  { %v2378_v27 = vpop.eup %2377  ;;  %v750_v10 = vpop.xlane.xlu1 %749  ;;  %v927_v51 = vand.u32 2147483648, %v3083_v31  ;;  %2397 = vrsqrt.f32 %v3085_v21  ;;  %v1093_v13 = vmax.f32 %v3266_v19, 1e-08  ;;  %v939_v14 = vsel %vm938_vm14, %v3109_v11, %v937_v23 }
 0x1d7   :  { %v2380_v41 = vpop.eup %2379  ;;  %2399 = vrsqrt.f32 %v1088_v4  ;;  %v1092_v56 = vmax.f32 %v750_v10, 1e-08  ;;  %vm931_vm8 = vcmp.eq.f32.partialorder %v3107_v54, inf  ;;  %v1151_v18 = vmul.f32 %v2376_v0, %v893_v26 }
 0x1d8   :  { %v2382_v40 = vpop.eup %2381  ;;  %v1168_v28 = vmul.f32 %v2380_v41, %v1012_v38  ;;  %v1049_v17 = vmul.f32 %v2372_v12, %v3135_v29  ;;  %vm898_vm9 = vcmp.eq.f32.partialorder %v3032_v5, 0.0  ;;  %2401 = vrsqrt.f32 %v3129_v52 }
 0x1d9   :  { %v2384_v45 = vpop.eup %2383  ;;  %2403 = vrsqrt.f32 %v1092_v56  ;;  %v3336_v34 = vpop.xlane.xlu0 %779  ;;  %v895_v19 = vmul.f32 %v2374_v1, %v3032_v5  ;;  %v934_v2 = vand.u32 2147483648, %v3107_v54  ;;  %vm1036_vm10 = vcmp.eq.f32.partialorder %v3101_v24, inf  ;;  %1201 = vperm.xlu1 %2094, %v1151_v18  }
 0x1da   :  { %v2386_v62 = vpop.eup %2385  ;;  %v782_v8 = vpop.xlane.xlu1 %781  ;;  %1286 = vperm.xlu0 %2083, %v1168_v28   ;;  %v911_v32 = vsel %vm910_vm1, %v3061_v43, %v909_v39  ;;  %v923_v48 = vmul.f32 %v2378_v27, %v3083_v31  ;;  %vm933_vm11 = vcmp.eq.f32.partialorder %v3107_v54, 0.0  ;;  %vm1038_vm12 = vcmp.eq.f32.partialorder %v3101_v24, 0.0 }
 0x1db   :  { %v1039_v63 = vand.u32 2147483648, %v3101_v24  ;;  %v1046_v26 = vand.u32 2147483648, %v3126_v58  ;;  %v2388_v55 = vpop.eup %2387  ;;  %2405 = vrsqrt.f32 %v1093_v13  ;;  %v1109_v49 = vmax.f32 %v3291_v16, 1e-08 }
 0x1dc   :  { %v1108_v12 = vmax.f32 %v782_v8, 1e-08  ;;  %v942_v4 = vsel %vm940_vm15, %v941_v25, %v939_v14  ;;  %vm1043_vm13 = vcmp.eq.f32.partialorder %v3126_v58, inf  ;;  %v2390_v57 = vpop.eup %2389  ;;  %v1167_v23 = vmul.f32 %v2384_v45, %v1005_v59 }
 0x1dd   :  { %v1158_v1 = vmul.f32 %v2388_v55, %v942_v4  ;;  %v1051_v22 = vsel %vm1050_vm2, %v3135_v29, %v1049_v17  ;;  %2407 = vrsqrt.f32 %v3091_v20  ;;  %v2392_v0 = vpop.eup %2391  ;;  %v914_v16 = vsel %vm912_vm3, %v913_v61, %v911_v32  ;;  %v3367_v27 = vpop.xlane.xlu0 %759 }
 0x1de   :  { %2409 = vrsqrt.f32 %v1108_v12  ;;  %v897_v11 = vsel %vm896_vm5, %v3032_v5, %v895_v19  ;;  %vm966_vm14 = vcmp.eq.f32.partialorder %v3159_v15, inf  ;;  %v2394_v25 = vpop.eup %2393  ;;  %v762_v38 = vpop.xlane.xlu1 %761  ;;  %1281 = vperm.xlu1 %2094, %v1167_v23   ;;  %v925_v10 = vsel %vm924_vm6, %v3083_v31, %v923_v48 }
 0x1df   :  { %1236 = vperm.xlu0 %2083, %v1158_v1   ;;  %v930_v59 = vmul.f32 %v2382_v40, %v3107_v54  ;;  %v1035_v43 = vmul.f32 %v2386_v62, %v3101_v24  ;;  %vm1045_vm15 = vcmp.eq.f32.partialorder %v3126_v58, 0.0  ;;  %2411 = vrsqrt.f32 %v3117_v44  ;;  %v2396_v61 = vpop.eup %2395 }
 0x1e0   :  { %2413 = vrsqrt.f32 %v1109_v49  ;;  %v1091_v39 = vmax.f32 %v3314_v3, 1e-08  ;;  %v1098_v41 = vmax.f32 %v762_v38, 1e-08  ;;  %v1054_v13 = vsel %vm1052_vm4, %v1053_v36, %v1051_v22  ;;  %v2398_v56 = vpop.eup %2397 }
 0x1e1   :  { %vm968_vm1 = vcmp.eq.f32.partialorder %v3159_v15, 0.0  ;;  %v1154_v14 = vmul.f32 %v2392_v0, %v914_v16  ;;  %v1174_v40 = vmul.f32 %v2396_v61, %v1054_v13  ;;  %v969_v18 = vand.u32 2147483648, %v3159_v15  ;;  %v2400_v28 = vpop.eup %2399  ;;  %v3403_v8 = vpop.xlane.xlu0 %791 }
 0x1e2   :  { %2415 = vrsqrt.f32 %v3146_v42  ;;  %v900_v3 = vsel %vm898_vm9, %v899_v6, %v897_v11  ;;  %v928_v29 = vsel %vm926_vm7, %v927_v51, %v925_v10  ;;  %vm917_vm2 = vcmp.eq.f32.partialorder %v3085_v21, inf  ;;  %v2402_v36 = vpop.eup %2401  ;;  %v794_v17 = vpop.xlane.xlu1 %793 }
 0x1e3   :  { %2417 = vrsqrt.f32 %v1098_v41  ;;  %1216 = vperm.xlu1 %2094, %v1154_v14   ;;  %1316 = vperm.xlu0 %2083, %v1174_v40   ;;  %v932_v45 = vsel %vm931_vm8, %v3107_v54, %v930_v59  ;;  %v1037_v5 = vsel %vm1036_vm10, %v3101_v24, %v1035_v43  ;;  %v1042_v6 = vmul.f32 %v2390_v57, %v3126_v58  ;;  %v2404_v31 = vpop.eup %2403 }
 0x1e4   :  { %2419 = vrsqrt.f32 %v3133_v7  ;;  %v1107_v51 = vmax.f32 %v3336_v34, 1e-08  ;;  %v1114_v19 = vmax.f32 %v794_v17, 1e-08  ;;  %v965_v62 = vmul.f32 %v2394_v25, %v3159_v15 }
 0x1e5   :  { %2421 = vrsqrt.f32 %v1091_v39  ;;  %v1152_v32 = vmul.f32 %v2400_v28, %v900_v3  ;;  %v1156_v48 = vmul.f32 %v2404_v31, %v928_v29  ;;  %vm919_vm3 = vcmp.eq.f32.partialorder %v3085_v21, 0.0  ;;  %v2406_v49 = vpop.eup %2405  ;;  %v756_v59 = vpop.xlane.xlu0 %755 }
 0x1e6   :  { %v920_v55 = vand.u32 2147483648, %v3085_v21  ;;  %2423 = vrsqrt.f32 %v1114_v19  ;;  %v935_v12 = vsel %vm933_vm11, %v934_v2, %v932_v45  ;;  %v1040_v34 = vsel %vm1038_vm12, %v1039_v63, %v1037_v5  ;;  %v758_v57 = vpop.xlane.xlu1 %757 }
 0x1e7   :  { %vm1078_vm4 = vcmp.eq.f32.partialorder %v3129_v52, inf  ;;  %v2408_v4 = vpop.eup %2407  ;;  %1206 = vperm.xlu1 %2094, %v1152_v32   ;;  %1226 = vperm.xlu0 %2083, %v1156_v48   ;;  %v1044_v23 = vsel %vm1043_vm13, %v3126_v58, %v1042_v6  ;;  %v916_v1 = vmul.f32 %v2398_v56, %v3085_v21  ;;  %v1077_v54 = vmul.f32 %v2402_v36, %v3129_v52 }
 0x1e8   :  { %2425 = vrsqrt.f32 %v3122_v9  ;;  %v2410_v2 = vpop.eup %2409  ;;  %v1097_v24 = vmax.f32 %v3367_v27, 1e-08  ;;  %v1096_v63 = vmax.f32 %v758_v57, 1e-08  ;;  %v967_v22 = vsel %vm966_vm14, %v3159_v15, %v965_v62 }
 0x1e9   :  { %2427 = vrsqrt.f32 %v1107_v51  ;;  %v2412_v0 = vpop.eup %2411  ;;  %v1157_v16 = vmul.f32 %v2406_v49, %v935_v12  ;;  %v1172_v11 = vmul.f32 %v2410_v2, %v1040_v34  ;;  %vm1080_vm5 = vcmp.eq.f32.partialorder %v3129_v52, 0.0  ;;  %v788_v19 = vpop.xlane.xlu0 %787 }
 0x1ea   :  { %v1081_v25 = vand.u32 2147483648, %v3129_v52  ;;  %v2414_v38 = vpop.eup %2413  ;;  %2429 = vrsqrt.f32 %v1096_v63  ;;  %v1047_v10 = vsel %vm1045_vm15, %v1046_v26, %v1044_v23  ;;  %vm1029_vm6 = vcmp.eq.f32.partialorder %v3091_v20, inf  ;;  %v790_v43 = vpop.xlane.xlu1 %789 }
 0x1eb   :  { %vm1031_vm7 = vcmp.eq.f32.partialorder %v3091_v20, 0.0  ;;  %1231 = vperm.xlu1 %2094, %v1157_v16   ;;  %1306 = vperm.xlu0 %2083, %v1172_v11   ;;  %v970_v61 = vsel %vm968_vm1, %v969_v18, %v967_v22  ;;  %v918_v39 = vsel %vm917_vm2, %v3085_v21, %v916_v1  ;;  %v1079_v58 = vsel %vm1078_vm4, %v3129_v52, %v1077_v54 }
 0x1ec   :  { %v2416_v27 = vpop.eup %2415  ;;  %2431 = vrsqrt.f32 %v3119_v50  ;;  %v1113_v41 = vmax.f32 %v3403_v8, 1e-08  ;;  %v1112_v13 = vmax.f32 %v790_v43, 1e-08  ;;  %v1028_v56 = vmul.f32 %v2408_v4, %v3091_v20 }
 0x1ed   :  { %v2418_v26 = vpop.eup %2417  ;;  %2433 = vrsqrt.f32 %v1097_v24  ;;  %v1173_v15 = vmul.f32 %v2414_v38, %v1047_v10  ;;  %v1032_v18 = vand.u32 2147483648, %v3091_v20  ;;  %v951_v28 = vmul.f32 %v2412_v0, %v3117_v44 }
 0x1ee   :  { %v2420_v14 = vpop.eup %2419  ;;  %v1162_v40 = vmul.f32 %v2418_v26, %v970_v61  ;;  %2435 = vrsqrt.f32 %v1112_v13  ;;  %vm952_vm8 = vcmp.eq.f32.partialorder %v3117_v44, inf  ;;  %vm954_vm9 = vcmp.eq.f32.partialorder %v3117_v44, 0.0 }
 0x1ef   :  { %v2422_v3 = vpop.eup %2421  ;;  %v955_v29 = vand.u32 2147483648, %v3117_v44  ;;  %1311 = vperm.xlu1 %2094, %v1173_v15   ;;  %v921_v36 = vsel %vm919_vm3, %v920_v55, %v918_v39  ;;  %v1082_v17 = vsel %vm1080_vm5, %v1081_v25, %v1079_v58  ;;  %vm959_vm10 = vcmp.eq.f32.partialorder %v3146_v42, inf }
 0x1f0   :  { %1256 = vperm.xlu0 %2083, %v1162_v40   ;;  %2437 = vrsqrt.f32 %v3124_v53  ;;  %v2424_v45 = vpop.eup %2423  ;;  %v1095_v5 = vmax.f32 %v756_v59, 1e-08  ;;  %v1030_v6 = vsel %vm1029_vm6, %v3091_v20, %v1028_v56  ;;  %v958_v31 = vmul.f32 %v2416_v27, %v3146_v42 }
 0x1f1   :  { %2439 = vrsqrt.f32 %v1113_v41  ;;  %v1155_v21 = vmul.f32 %v2422_v3, %v921_v36  ;;  %v1178_v62 = vmul.f32 %v2424_v45, %v1082_v17  ;;  %v953_v52 = vsel %vm952_vm8, %v3117_v44, %v951_v28  ;;  %v2086_v15 = vpop.permute.xlu0 %2085 }
 0x1f2   :  { %v2426_v51 = vpop.eup %2425  ;;  %v1063_v8 = vmul.f32 %v2420_v14, %v3133_v7  ;;  %vm961_vm11 = vcmp.eq.f32.partialorder %v3146_v42, 0.0  ;;  %vm1064_vm12 = vcmp.eq.f32.partialorder %v3133_v7, inf  ;;  %v1033_v48 = vsel %vm1031_vm7, %v1032_v18, %v1030_v6  ;;  %v2097_v14 = vpop.permute.xlu1 %2096 }
 0x1f3   :  { %v2428_v32 = vpop.eup %2427  ;;  %1221 = vperm.xlu1 %2094, %v1155_v21   ;;  %v962_v55 = vand.u32 2147483648, %v3146_v42  ;;  %vm1066_vm13 = vcmp.eq.f32.partialorder %v3133_v7, 0.0  ;;  %v1067_v49 = vand.u32 2147483648, %v3133_v7  ;;  %2441 = vrsqrt.f32 %v1095_v5 }
 0x1f4   :  { %1336 = vperm.xlu0 %2083, %v1178_v62   ;;  %v2430_v12 = vpop.eup %2429  ;;  %v1111_v34 = vmax.f32 %v788_v19, 1e-08  ;;  %v956_v4 = vsel %vm954_vm9, %v955_v29, %v953_v52  ;;  %v960_v57 = vsel %vm959_vm10, %v3146_v42, %v958_v31  ;;  %v1171_v1 = vmul.f32 %v2428_v32, %v1033_v48 }
 0x1f5   :  { %v1160_v20 = vmul.f32 %v2430_v12, %v956_v4  ;;  %v1065_v54 = vsel %vm1064_vm12, %v3133_v7, %v1063_v8  ;;  %v1070_v2 = vmul.f32 %v2426_v51, %v3122_v9  ;;  %vm1071_vm14 = vcmp.eq.f32.partialorder %v3122_v9, inf  ;;  %v2091_v18 = vpop.permute.xlu0 %2090  ;;  %v3714_v12 = vld [vmem:[#allocation16_spill] sm:$0xff] }
 0x1f6   :  { %v2432_v23 = vpop.eup %2431  ;;  %vm1073_vm15 = vcmp.eq.f32.partialorder %v3122_v9, 0.0  ;;  %2443 = vrsqrt.f32 %v1111_v34  ;;  %v963_v63 = vsel %vm961_vm11, %v962_v55, %v960_v57  ;;  %v1068_v22 = vsel %vm1066_vm13, %v1067_v49, %v1065_v54  ;;  %v2102_v40 = vpop.permute.xlu1 %2101 }
 0x1f7   :  { %v2434_v24 = vpop.eup %2433  ;;  %1301 = vperm.xlu1 %2094, %v1171_v1   ;;  %v1074_v0 = vand.u32 2147483648, %v3122_v9  ;;  %v1072_v38 = vsel %vm1071_vm14, %v3122_v9, %v1070_v2  ;;  %v944_v10 = vmul.f32 %v2432_v23, %v3119_v50  ;;  %vm945_vm1 = vcmp.eq.f32.partialorder %v3119_v50, inf }
 0x1f8   :  { %1246 = vperm.xlu0 %2083, %v1160_v20   ;;  %v2436_v44 = vpop.eup %2435  ;;  %v1161_v11 = vmul.f32 %v2434_v24, %v963_v63  ;;  %v2160_v42 = vpack.i.bf16 %v3074_v33, %v3067_v37  ;;  %v948_v7 = vand.u32 2147483648, %v3119_v50  ;;  %vm947_vm2 = vcmp.eq.f32.partialorder %v3119_v50, 0.0  ;;  %v3715_v24 = vld [vmem:[#allocation15_spill] sm:$0xff] }
 0x1f9   :  { %v1176_v25 = vmul.f32 %v2436_v44, %v1068_v22  ;;  %v1075_v59 = vsel %vm1073_vm15, %v1074_v0, %v1072_v38  ;;  %v946_v61 = vsel %vm945_vm1, %v3119_v50, %v944_v10  ;;  %vm1057_vm3 = vcmp.eq.f32.partialorder %v3124_v53, inf  ;;  %v3502_v3 = vpop.permute.xlu0 %2106  ;;  %v3717_v22 = vld [vmem:[#allocation14_spill] sm:$0xff] }
 0x1fa   :  { %v2438_v16 = vpop.eup %2437  ;;  %v949_v58 = vsel %vm947_vm2, %v948_v7, %v946_v61  ;;  %v1060_v26 = vand.u32 2147483648, %v3124_v53  ;;  %vm1059_vm4 = vcmp.eq.f32.partialorder %v3124_v53, 0.0  ;;  %v2155_v50 = vpack.i.bf16 %v3081_v60, %v3069_v46  ;;  %v3500_v28 = vpop.permute.xlu1 %2116  ;;  %v3718_v7 = vld [vmem:[#allocation17_spill] sm:$0xff] }
 0x1fb   :  { %v2440_v27 = vpop.eup %2439  ;;  %1251 = vperm.xlu1 %2094, %v1161_v11   ;;  %v1056_v9 = vmul.f32 %v2438_v16, %v3124_v53  ;;  %v2093_v52 = vunpack.i.h.bf16 %v2091_v18  ;;  %v2092_v8 = vunpack.i.l.bf16 %v2091_v18  ;;  %v2088_v57 = vunpack.i.h.bf16 %v2086_v15 }
 0x1fc   :  { %1326 = vperm.xlu0 %2083, %v1176_v25   ;;  %v1177_v43 = vmul.f32 %v2440_v27, %v1075_v59  ;;  %v2087_v23 = vunpack.i.l.bf16 %v2086_v15  ;;  %v2104_v54 = vunpack.i.h.bf16 %v2102_v40  ;;  %v2103_v2 = vunpack.i.l.bf16 %v2102_v40 }
 0x1fd   :  { %v2442_v39 = vpop.eup %2441  ;;  %v1058_v37 = vsel %vm1057_vm3, %v3124_v53, %v1056_v9  ;;  %v2112_v53 = vpop.permute.xlu0 %2111  ;;  %v2099_v59 = vunpack.i.h.bf16 %v2097_v14 }
 0x1fe   :  { %v1159_v41 = vmul.f32 %v2442_v39, %v949_v58  ;;  %v1061_v13 = vsel %vm1059_vm4, %v1060_v26, %v1058_v37  ;;  %v3504_v29 = vpop.permute.xlu1 %2121 }
 0x1ff   :  { %1331 = vperm.xlu1 %2094, %v1177_v43  }
 0x200   :  { %2161 = vperm.xlu0 %2083, %v2160_v42   ;;  %v2444_v33 = vpop.eup %2443  ;;  %v2098_v42 = vunpack.i.l.bf16 %v2097_v14 }
 0x201   :  { %v1175_v56 = vmul.f32 %v2444_v33, %v1061_v13  ;;  %v3508_v17 = vpop.permute.xlu0 %2126  ;;  %v2114_v13 = vunpack.i.h.bf16 %v2112_v53 }
 0x202   :  { %v3506_v36 = vpop.permute.xlu1 %2136 }
 0x203   :  { %1241 = vperm.xlu1 %2094, %v1159_v41   ;;  %v3719_v41 = vld [vmem:[#allocation22_spill] sm:$0xff] }
 0x205   :  { %v3512_v5 = vpop.permute.xlu0 %2131 }
 0x206   :  { %v3510_v45 = vpop.permute.xlu1 %2141 }
 0x207   :  { %1321 = vperm.xlu1 %2094, %v1175_v56   ;;  %v2113_v56 = vunpack.i.l.bf16 %v2112_v53  ;;  %v2123_v53 = vunpack.i.l.bf16 %v3504_v29 }
 0x209   :  { %v3516_v60 = vpop.permute.xlu0 %2146 }
 0x20a   :  { %v3514_v46 = vpop.permute.xlu1 %2151 }
 0x20b   :  { %2156 = vperm.xlu1 %2094, %v2155_v50   ;;  %v3720_v50 = vld [vmem:[#allocation21_spill] sm:$0xff] }
 0x23c   :  { %v1192_v6 = vpop.permute.xlu1 %1191 }
 0x23d   :  { %v1341_v48 = vmul.f32 %v1192_v6, %v2590_v35 }
 0x23f   :  { %v1533_v35 = vsel %vm48_vm0, %v2087_v23, %v1341_v48  ;;  %v3723_v48 = vld [vmem:[#allocation19_spill] sm:$0xff] }
 0x240   :  { %v1182_v31 = vpop.permute.xlu0 %1181  ;;  %v1272_v51 = vpop.permute.xlu1 %1271 }
 0x241   :  { %v1357_v19 = vmul.f32 %v1272_v51, %v2586_v30  ;;  %v1339_v0 = vmul.f32 %v1182_v31, %v3717_v22  ;;  %v3721_v51 = vld [vmem:[#allocation26_spill] sm:$0xff]  ;;  %v2119_v22 = vunpack.i.h.bf16 %v3500_v28 }
 0x243   :  { %v1549_v49 = vsel %vm48_vm0, %v2092_v8, %v1357_v19  ;;  %v1531_v61 = vsel %vm48_vm0, %v2098_v42, %v1339_v0  ;;  %v3722_v8 = vld [vmem:[#allocation25_spill] sm:$0xff]  ;;  %v2118_v0 = vunpack.i.l.bf16 %v3500_v28 }
 0x244   :  { %v1262_v21 = vpop.permute.xlu1 %1261 }
 0x245   :  { %v1277_v62 = vpop.permute.xlu0 %1276  ;;  %v1355_v34 = vmul.f32 %v1262_v21, %v3714_v12 }
 0x246   :  { %v1358_v32 = vmul.f32 %v1277_v62, %v2608_v47  ;;  %v3716_v47 = vld [vmem:[#allocation18_spill] sm:$0xff] }
 0x247   :  { %v1547_v16 = vsel %vm48_vm0, %v2103_v2, %v1355_v34  ;;  %v3725_v2 = vld [vmem:[#allocation23_spill] sm:$0xff] }
 0x248   :  { %v1550_v4 = vsel %vm48_vm0, %v2093_v52, %v1358_v32  ;;  %v1197_v30 = vpop.permute.xlu1 %1196  ;;  %v2124_v52 = vunpack.i.h.bf16 %v3504_v29 }
 0x249   :  { %v1942_v1 = vpack.c.bf16 %v1550_v4, %v1549_v49  ;;  %v1267_v20 = vpop.permute.xlu0 %1266  ;;  %v1342_v44 = vmul.f32 %v1197_v30, %v3715_v24  ;;  %v2108_v30 = vunpack.i.l.bf16 %v3502_v3 }
 0x24a   :  { %v1356_v63 = vmul.f32 %v1267_v20, %v3716_v47  ;;  %v3724_v20 = vld [vmem:[#allocation20_spill] sm:$0xff] }
 0x24b   :  { %1982 = vst [vmem:[#allocation9 + $0x48] sm:$0xff] %v1942_v1   ;;  %v1534_v11 = vsel %vm48_vm0, %v2088_v57, %v1342_v44  ;;  %v2109_v1 = vunpack.i.h.bf16 %v3502_v3 }
 0x24c   :  { %v1548_v25 = vsel %vm48_vm0, %v2104_v54, %v1356_v63  ;;  %v1902_v38 = vpack.c.bf16 %v1534_v11, %v1533_v35  ;;  %v1187_v27 = vpop.permute.xlu1 %1186 }
 0x24d   :  { %v1937_v10 = vpack.c.bf16 %v1548_v25, %v1547_v16  ;;  %v1340_v43 = vmul.f32 %v1187_v27, %v3718_v7  ;;  %v3726_v16 = vld [vmem:[#allocation24_spill] sm:$0xff]  ;;  %v2129_v7 = vunpack.i.h.bf16 %v3508_v17 }
 0x24e   :  { %1974 = vst [vmem:[#allocation9 + $0x8] sm:$0xff] %v1902_v38   ;;  %v3727_v25 = vld [vmem:[#allocation28_spill] sm:$0xff] }
 0x24f   :  { %1981 = vst [vmem:[#allocation9 + $0x40] sm:$0xff] %v1937_v10   ;;  %v1532_v9 = vsel %vm48_vm0, %v2099_v59, %v1340_v43  ;;  %v2128_v43 = vunpack.i.l.bf16 %v3508_v17 }
 0x250   :  { %v1897_v39 = vpack.c.bf16 %v1532_v9, %v1531_v61  ;;  %v1212_v58 = vpop.permute.xlu1 %1211  ;;  %v3728_v61 = vld [vmem:[#allocation27_spill] sm:$0xff] }
 0x251   :  { %v1297_v26 = vpop.permute.xlu0 %1296  ;;  %v1345_v49 = vmul.f32 %v1212_v58, %v3723_v48 }
 0x252   :  { %1898 = vst [vmem:[#allocation9] sm:$0xff] %v1897_v39   ;;  %v1362_v37 = vmul.f32 %v1297_v26, %v3719_v41  ;;  %v3729_v39 = vld [vmem:[#allocation30_spill] sm:$0xff] }
 0x253   :  { %v1537_v29 = vsel %vm48_vm0, %v2108_v30, %v1345_v49 }
 0x254   :  { %v1292_v33 = vpop.permute.xlu1 %1291  ;;  %v1554_v15 = vsel %vm48_vm0, %v2114_v13, %v1362_v37  ;;  %v2134_v13 = vunpack.i.h.bf16 %v3512_v5 }
 0x255   :  { %v1361_v14 = vmul.f32 %v1292_v33, %v3720_v50  ;;  %v3730_v50 = vld [vmem:[#allocation29_spill] sm:$0xff] }
 0x257   :  { %v1553_v40 = vsel %vm48_vm0, %v2113_v56, %v1361_v14  ;;  %v2133_v56 = vunpack.i.l.bf16 %v3512_v5 }
 0x258   :  { %v1952_v18 = vpack.c.bf16 %v1554_v15, %v1553_v40  ;;  %v1202_v6 = vpop.permute.xlu1 %1201  ;;  %v3731_v15 = vld [vmem:[#allocation32_spill] sm:$0xff] }
 0x259   :  { %v1287_v31 = vpop.permute.xlu0 %1286  ;;  %v1343_v24 = vmul.f32 %v1202_v6, %v3725_v2 }
 0x25a   :  { %1984 = vst [vmem:[#allocation9 + $0x58] sm:$0xff] %v1952_v18   ;;  %v1360_v19 = vmul.f32 %v1287_v31, %v3721_v51 }
 0x25b   :  { %v1535_v11 = vsel %vm48_vm0, %v2118_v0, %v1343_v24  ;;  %v2149_v24 = vunpack.i.h.bf16 %v3516_v60 }
 0x25c   :  { %v1552_v12 = vsel %vm48_vm0, %v2124_v52, %v1360_v19  ;;  %v2139_v19 = vunpack.i.h.bf16 %v3506_v36 }
 0x25d   :  { %v1282_v21 = vpop.permute.xlu1 %1281 }
 0x25e   :  { %v1237_v62 = vpop.permute.xlu0 %1236  ;;  %v1359_v32 = vmul.f32 %v1282_v21, %v3722_v8  ;;  %v2138_v21 = vunpack.i.l.bf16 %v3506_v36 }
 0x25f   :  { %v1350_v38 = vmul.f32 %v1237_v62, %v3727_v25  ;;  %v3732_v62 = vld [vmem:[#allocation31_spill] sm:$0xff]  ;;  %v3738_v25 = vld [vmem:[#allocation37_spill] sm:$0xff] }
 0x260   :  { %v1551_v34 = vsel %vm48_vm0, %v2123_v53, %v1359_v32  ;;  %v3733_v53 = vld [vmem:[#allocation34_spill] sm:$0xff] }
 0x261   :  { %v1947_v4 = vpack.c.bf16 %v1552_v12, %v1551_v34  ;;  %v1542_v9 = vsel %vm48_vm0, %v2129_v7, %v1350_v38  ;;  %v2144_v34 = vunpack.i.h.bf16 %v3510_v45 }
 0x262   :  { %v1217_v57 = vpop.permute.xlu1 %1216  ;;  %v1317_v23 = vpop.permute.xlu0 %1316 }
 0x263   :  { %v1346_v54 = vmul.f32 %v1217_v57, %v3724_v20  ;;  %1983 = vst [vmem:[#allocation9 + $0x50] sm:$0xff] %v1947_v4   ;;  %v1366_v58 = vmul.f32 %v1317_v23, %v3729_v39  ;;  %v2143_v4 = vunpack.i.l.bf16 %v3510_v45  ;;  %v3734_v57 = vld [vmem:[#allocation33_spill] sm:$0xff]  ;;  %v3740_v39 = vld [vmem:[#allocation39_spill] sm:$0xff] }
 0x265   :  { %v1538_v44 = vsel %vm48_vm0, %v2109_v1, %v1346_v54  ;;  %v1558_v14 = vsel %vm48_vm0, %v2134_v13, %v1366_v58  ;;  %v3735_v1 = vld [vmem:[#allocation36_spill] sm:$0xff] }
 0x266   :  { %v1912_v47 = vpack.c.bf16 %v1538_v44, %v1537_v29  ;;  %v1207_v63 = vpop.permute.xlu1 %1206  ;;  %v1227_v35 = vpop.permute.xlu0 %1226  ;;  %v2148_v44 = vunpack.i.l.bf16 %v3516_v60  ;;  %v3739_v60 = vld [vmem:[#allocation40_spill] sm:$0xff] }
 0x267   :  { %v1344_v3 = vmul.f32 %v1207_v63, %v3726_v16  ;;  %v1348_v40 = vmul.f32 %v1227_v35, %v3731_v15 }
 0x268   :  { %1976 = vst [vmem:[#allocation9 + $0x18] sm:$0xff] %v1912_v47   ;;  %v3736_v47 = vld [vmem:[#allocation35_spill] sm:$0xff] }
 0x269   :  { %v1536_v10 = vsel %vm48_vm0, %v2119_v22, %v1344_v3  ;;  %v1540_v52 = vsel %vm48_vm0, %v2139_v19, %v1348_v40  ;;  %v3737_v3 = vld [vmem:[#allocation38_spill] sm:$0xff] }
 0x26a   :  { %v1907_v27 = vpack.c.bf16 %v1536_v10, %v1535_v11  ;;  %v1232_v59 = vpop.permute.xlu1 %1231  ;;  %v1307_v42 = vpop.permute.xlu0 %1306 }
 0x26b   :  { %v1349_v28 = vmul.f32 %v1232_v59, %v3728_v61  ;;  %v1364_v8 = vmul.f32 %v1307_v42, %v3733_v53 }
 0x26c   :  { %1975 = vst [vmem:[#allocation9 + $0x10] sm:$0xff] %v1907_v27  }
 0x26d   :  { %v1541_v26 = vsel %vm48_vm0, %v2128_v43, %v1349_v28  ;;  %v1556_v23 = vsel %vm48_vm0, %v2144_v34, %v1364_v8  ;;  %v2154_v28 = vunpack.i.h.bf16 %v3514_v46 }
 0x26e   :  { %v1922_v41 = vpack.c.bf16 %v1542_v9, %v1541_v26  ;;  %v1312_v37 = vpop.permute.xlu1 %1311  ;;  %v2153_v9 = vunpack.i.l.bf16 %v3514_v46 }
 0x26f   :  { %v1257_v33 = vpop.permute.xlu0 %1256  ;;  %v1365_v17 = vmul.f32 %v1312_v37, %v3730_v50 }
 0x270   :  { %1978 = vst [vmem:[#allocation9 + $0x28] sm:$0xff] %v1922_v41   ;;  %v1354_v30 = vmul.f32 %v1257_v33, %v3735_v1 }
 0x271   :  { %v1557_v18 = vsel %vm48_vm0, %v2133_v56, %v1365_v17  ;;  %v3741_v56 = vld [vmem:[#allocation42_spill] sm:$0xff]  ;;  %v3742_v17 = vld [vmem:[#allocation41_spill] sm:$0xff] }
 0x272   :  { %v1962_v6 = vpack.c.bf16 %v1558_v14, %v1557_v18  ;;  %v1222_v31 = vpop.permute.xlu1 %1221  ;;  %v1546_v63 = vsel %vm48_vm0, %v2149_v24, %v1354_v30 }
 0x273   :  { %v1337_v51 = vpop.permute.xlu0 %1336  ;;  %v1347_v5 = vmul.f32 %v1222_v31, %v3732_v62 }
 0x274   :  { %1986 = vst [vmem:[#allocation9 + $0x68] sm:$0xff] %v1962_v6   ;;  %v1370_v11 = vmul.f32 %v1337_v51, %v3737_v3 }
 0x275   :  { %v1539_v32 = vsel %vm48_vm0, %v2138_v21, %v1347_v5 }
 0x276   :  { %v1917_v48 = vpack.c.bf16 %v1540_v52, %v1539_v32  ;;  %v1302_v49 = vpop.permute.xlu1 %1301 }
 0x277   :  { %v1247_v12 = vpop.permute.xlu0 %1246  ;;  %v1363_v36 = vmul.f32 %v1302_v49, %v3734_v57 }
 0x278   :  { %1977 = vst [vmem:[#allocation9 + $0x20] sm:$0xff] %v1917_v48   ;;  %v1352_v59 = vmul.f32 %v1247_v12, %v3739_v60 }
 0x279   :  { %v1555_v20 = vsel %vm48_vm0, %v2143_v4, %v1363_v36 }
 0x27a   :  { %v1957_v54 = vpack.c.bf16 %v1556_v23, %v1555_v20  ;;  %v1252_v29 = vpop.permute.xlu1 %1251  ;;  %v1544_v26 = vsel %vm48_vm0, %v2154_v28, %v1352_v59 }
 0x27b   :  { %v1327_v2 = vpop.permute.xlu0 %1326  ;;  %v1353_v45 = vmul.f32 %v1252_v29, %v3736_v47 }
 0x27c   :  { %1985 = vst [vmem:[#allocation9 + $0x60] sm:$0xff] %v1957_v54   ;;  %v1368_v50 = vmul.f32 %v1327_v2, %v3741_v56 }
 0x27d   :  { %v1545_v35 = vsel %vm48_vm0, %v2148_v44, %v1353_v45 }
 0x27e   :  { %v1932_v22 = vpack.c.bf16 %v1546_v63, %v1545_v35  ;;  %v1332_v0 = vpop.permute.xlu1 %1331 }
 0x27f   :  { %v2162_v16 = vpop.permute.xlu0 %2161  ;;  %v1369_v38 = vmul.f32 %v1332_v0, %v3738_v25 }
 0x280   :  { %v2164_v10 = vunpack.i.h.bf16 %v2162_v16  ;;  %v2163_v27 = vunpack.i.l.bf16 %v2162_v16  ;;  %1980 = vst [vmem:[#allocation9 + $0x38] sm:$0xff] %v1932_v22  }
 0x282   :  { %v1562_v42 = vsel %vm48_vm0, %v2164_v10, %v1370_v11  ;;  %v1561_v7 = vsel %vm48_vm0, %v2163_v27, %v1369_v38  ;;  %v1242_v61 = vpop.permute.xlu1 %1241 }
 0x283   :  { %v1972_v43 = vpack.c.bf16 %v1562_v42, %v1561_v7  ;;  %v1351_v58 = vmul.f32 %v1242_v61, %v3740_v39 }
 0x285   :  { %1988 = vst [vmem:[#allocation9 + $0x78] sm:$0xff] %v1972_v43   ;;  %v1543_v41 = vsel %vm48_vm0, %v2153_v9, %v1351_v58 }
 0x286   :  { %v1927_v37 = vpack.c.bf16 %v1544_v26, %v1543_v41  ;;  %v1322_v33 = vpop.permute.xlu1 %1321 }
 0x287   :  { %v1367_v14 = vmul.f32 %v1322_v33, %v3742_v17 }
 0x288   :  { %1979 = vst [vmem:[#allocation9 + $0x30] sm:$0xff] %v1927_v37  }
 0x28a   :  { %v2157_v13 = vpop.permute.xlu1 %2156 }
 0x28b   :  { %v2159_v15 = vunpack.i.h.bf16 %v2157_v13  ;;  %v2158_v40 = vunpack.i.l.bf16 %v2157_v13 }
 0x28d   :  { %v1559_v46 = vsel %vm48_vm0, %v2158_v40, %v1367_v14  ;;  %v1560_v18 = vsel %vm48_vm0, %v2159_v15, %v1368_v50 }
 0x28e   :  { %v1967_v6 = vpack.c.bf16 %v1560_v18, %v1559_v46 }
 0x290   :  { %1987 = vst [vmem:[#allocation9 + $0x70] sm:$0xff] %v1967_v6  }
 0x291   :  { %2500 = shalt.err (!%p2497_p6)
}
 0x292   :  { %s2501_s20 = scalar_lea.hbm %s3651_s4, 2048 }
 0x293   :  { %p2502_p7 = scmp.ne.s32.totalorder %s3651_s4, %s2501_s20  ;;  %p2505_p8 = scmp.lt.u32.totalorder %s2501_s20, %s3651_s4 }
 0x295   :  { %p2507_p9 = pnand %p2505_p8, %p2502_p7 }
 0x297   :  { %2510 = shalt.err (!%p2507_p9)
}
 0x298   :  { %1734 = dma.vmem_to_hbm [thread:$0]  %s1729_s16, 2048, %s3651_s4, [#allocation6], %s2518_s25, %s2518_s25, %s2519_s26  }
 0x299   :  { %2515 = dma.done.wait [#allocation6], 2048  }
 0x29a   :  { %2516 = vsyncadd [#allocation6], 4294965248 }
 0x29b   :  { %1738 = vsyncpa [#allocation5], 1 }
 0x29c   :  { %1739 = vsyncpa [#allocation8], 1 }
 0x29d   :  { %1740 = vsyncpa [#allocation6], 1 }

</bundles_post_ra>
